<compile_context>
chip_gen: v5e
topology: v5e:2x2
jax: 0.10.0
libtpu: 0.0.40
codegen_flags: <defaults>
</compile_context>

<pallas_src>
import numpy as np

import jax
import jax.numpy as jnp
from jax import lax
from jax.experimental import pallas as pl
from jax.experimental.pallas import tpu as pltpu


# ------------------------------ fused kernel -------------------------------

def _net_kernel(x_ref,
                a1_ref, b1_ref, a2_ref, b2_ref,
                f1w_ref, f1b_ref, f2w_ref, f2b_ref, f3w_ref, f3b_ref,
                o_ref):
    f32, bf16 = jnp.float32, jnp.bfloat16
    tb = x_ref.shape[1]                      # batch tile

    # x_ref: (4, tb, 7, 28) = input rows split by residue mod 4 (done in wrapper)
    xr = [x_ref[r] for r in range(4)]        # each (tb, 7, 28) f32

    # ---- conv1 (1->10, 5x5, valid) as ONE matmul, K = 5*28 = 140 -----------
    # Row order: s-major blocks, s = output_row % 4; within a block rows are
    # (b, h4) with output_row = 4*h4 + s.  Lanes of the output:
    # parity_w*128 + w2*10 + cout  (even/odd output columns in separate halves).
    blocks = []
    for s in range(4):
        parts = []
        for kh in range(5):
            r, d = (s + kh) % 4, (s + kh) // 4
            parts.append(xr[r][:, d:d + 6, :])                    # (tb, 6, 28)
        blocks.append(jnp.concatenate(parts, axis=-1).reshape(tb * 6, 140))
    slab1 = jnp.concatenate(blocks, axis=0).astype(bf16)          # (tb*24, 140)

    y1 = jnp.dot(slab1, a1_ref[...], preferred_element_type=f32)  # (tb*24, 256)
    y1 = jnp.maximum(y1 + b1_ref[...], 0.0)

    # ---- 2x2 max pool #1: pure VPU maxes on aligned slices -----------------
    pw1 = jnp.maximum(y1[:, :128], y1[:, 128:])                   # W-pool
    n6 = tb * 6
    x2e = jnp.maximum(pw1[0 * n6:1 * n6], pw1[1 * n6:2 * n6])     # even pooled rows
    x2o = jnp.maximum(pw1[2 * n6:3 * n6], pw1[3 * n6:4 * n6])     # odd pooled rows
    x2p = (x2e.astype(bf16).reshape(tb, 6, 128),
           x2o.astype(bf16).reshape(tb, 6, 128))                  # lanes = w*10+cin

    # ---- conv2 (10->14, 5x5, valid) as ONE matmul, K = 5*128 = 640 ---------
    # Row order: P-major blocks, P = output_row % 2; rows (b, q), out_row = 2q+P.
    blocks = []
    for P in range(2):
        parts = []
        for kh in range(5):
            par, d = (P + kh) % 2, (P + kh) // 2
            parts.append(x2p[par][:, d:d + 4, :])                 # (tb, 4, 128)
        blocks.append(jnp.concatenate(parts, axis=-1).reshape(tb * 4, 640))
    slab2 = jnp.concatenate(blocks, axis=0)                       # (tb*8, 640) bf16

    y2 = jnp.dot(slab2, a2_ref[...], preferred_element_type=f32)  # (tb*8, 256)
    y2 = jnp.maximum(y2 + b2_ref[...], 0.0)

    # ---- 2x2 max pool #2 ----------------------------------------------------
    pw2 = jnp.maximum(y2[:, :128], y2[:, 128:])                   # (tb*8, 128)
    n4 = tb * 4
    x4 = jnp.maximum(pw2[:n4], pw2[n4:]).astype(bf16)             # (tb*4, 128)
    x4 = x4.reshape(tb, 4, 128)            # rows (b, h''), lanes = w''*14 + c

    # ---- fc1 (224->320, padded K=512) + ReLU, single matmul ----------------
    h = jnp.concatenate([x4[:, q, :] for q in range(4)], axis=-1)  # (tb, 512)
    h = jnp.dot(h, f1w_ref[...], preferred_element_type=f32) + f1b_ref[...]
    h = jnp.maximum(h, 0.0)

    # ---- fc2 (320->50) + ReLU ----------------------------------------------
    h = jnp.dot(h.astype(bf16), f2w_ref[...],
                preferred_element_type=f32) + f2b_ref[...]
    h = jnp.maximum(h, 0.0)

    # ---- fc3 (50->10) --------------------------------------------------------
    out = jnp.dot(h.astype(bf16), f3w_ref[...],
                  preferred_element_type=f32) + f3b_ref[...]
    o_ref[...] = out.astype(o_ref.dtype)


# --------------------------- one-time weight packing ------------------------

def _band_conv(w, in_w, chunk):
    """PyTorch conv weight (Cout, Cin, 5, 5) -> banded matmul weight of shape
    (5*chunk, 256): row = kh*chunk + w_in*Cin + ci,
    col = (ow%2)*128 + (ow//2)*Cout + co, nonzero iff 0 <= w_in-ow < 5."""
    cout, cin, kh_n, kw_n = w.shape
    out_w = in_w - kw_n + 1
    a = np.zeros((kh_n * chunk, 256), np.float32)
    for kh in range(kh_n):
        for kw in range(kw_n):
            for ow in range(out_w):
                wi = ow + kw
                p, w2 = ow % 2, ow // 2
                row0 = kh * chunk + wi * cin
                col0 = p * 128 + w2 * cout
                a[row0:row0 + cin, col0:col0 + cout] = w[:, :, kh, kw].T
    return a


def _pack_bias(b, cout, out_w):
    v = np.zeros((1, 256), np.float32)
    for w2 in range(out_w // 2):
        v[0, w2 * cout:(w2 + 1) * cout] = b
        v[0, 128 + w2 * cout:128 + (w2 + 1) * cout] = b
    return v


def pack_params(p):
    """Repack PyTorch-layout params into kernel layout (called once, host side)."""
    w1 = np.asarray(p["conv1_w"], np.float32); b1 = np.asarray(p["conv1_b"], np.float32)
    w2 = np.asarray(p["conv2_w"], np.float32); b2 = np.asarray(p["conv2_b"], np.float32)
    f1w = np.asarray(p["fc1_w"], np.float32); f1b = np.asarray(p["fc1_b"], np.float32)
    f2w = np.asarray(p["fc2_w"], np.float32); f2b = np.asarray(p["fc2_b"], np.float32)
    f3w = np.asarray(p["fc3_w"], np.float32); f3b = np.asarray(p["fc3_b"], np.float32)

    # fc1: torch flatten index c*16 + h*4 + w  ->  kernel lane h*128 + w*14 + c.
    f1p = np.zeros((512, 320), np.float32)
    for h in range(4):
        for w in range(4):
            for c in range(14):
                f1p[h * 128 + w * 14 + c, :] = f1w[:, c * 16 + h * 4 + w]

    packed = {
        "a1": _band_conv(w1, in_w=28, chunk=28),    # (140, 256)
        "b1": _pack_bias(b1, 10, 24),
        "a2": _band_conv(w2, in_w=12, chunk=128),   # (640, 256)
        "b2": _pack_bias(b2, 14, 8),
        "f1w": f1p,              "f1b": f1b[None, :],
        "f2w": f2w.T.copy(),     "f2b": f2b[None, :],
        "f3w": f3w.T.copy(),     "f3b": f3b[None, :],
    }
    out = {}
    for k, v in packed.items():
        dt = jnp.bfloat16 if k in ("a1", "a2", "f1w", "f2w", "f3w") else jnp.float32
        out[k] = jnp.asarray(v, dt)
    return out


_WEIGHT_ORDER = ("a1", "b1", "a2", "b2",
                 "f1w", "f1b", "f2w", "f2b", "f3w", "f3b")


# ------------------------------- the forward --------------------------------

def _const_spec(shape):
    nd = len(shape)
    return pl.BlockSpec(tuple(int(s) for s in shape), lambda i, _nd=nd: (0,) * _nd)


def _batch_tile(batch):
    """8-aligned divisor of batch giving >=2 grid steps (v7x dual-TC), cap 64."""
    if batch < 16:
        return batch
    for t in (64, 56, 48, 40, 32, 24, 16, 8):
        if 2 * t <= batch and batch % t == 0:
            return t
    return batch   # no clean divisor: single block (correct, just unsharded)


def net_forward(packed, x):
    """x: (B, 1, 28, 28) NCHW float32 -> logits (B, 10)."""
    batch = x.shape[0]
    x3 = x.reshape(batch, 28, 28)                       # Cin == 1, free squeeze
    # Split input rows by residue mod 4 so both pools' H-compaction becomes
    # contiguous row-block maxes inside the kernel (layout plumbing, XLA-side).
    xs = jnp.stack([x3[:, r::4, :] for r in range(4)], axis=0)   # (4, B, 7, 28)
    tb = _batch_tile(batch)
    ws = [packed[k] for k in _WEIGHT_ORDER]
    in_specs = [pl.BlockSpec((4, tb, 7, 28), lambda i: (0, i, 0, 0))]
    in_specs += [_const_spec(w.shape) for w in ws]
    return pl.pallas_call(
        _net_kernel,
        out_shape=jax.ShapeDtypeStruct((batch, 10), jnp.float32),
        grid=(batch // tb,),
        in_specs=in_specs,
        out_specs=pl.BlockSpec((tb, 10), lambda i: (i, 0)),
        compiler_params=pltpu.CompilerParams(
            dimension_semantics=("parallel",),
            vmem_limit_bytes=32 * 1024 * 1024),
    )(xs, *ws)


# --------------------------- init + pure-JAX reference ----------------------

def init_params(key):
    def uniform(k, shape, fan_in):
        bound = 1.0 / float(fan_in) ** 0.5
        return jax.random.uniform(k, shape, jnp.float32, -bound, bound)

    ks = jax.random.split(key, 10)
    return {
        "conv1_w": uniform(ks[0], (10, 1, 5, 5), 25),
        "conv1_b": uniform(ks[1], (10,), 25),
        "conv2_w": uniform(ks[2], (14, 10, 5, 5), 250),
        "conv2_b": uniform(ks[3], (14,), 250),
        "fc1_w":   uniform(ks[4], (320, 224), 224),
        "fc1_b":   uniform(ks[5], (320,), 224),
        "fc2_w":   uniform(ks[6], (50, 320), 320),
        "fc2_b":   uniform(ks[7], (50,), 320),
        "fc3_w":   uniform(ks[8], (10, 50), 50),
        "fc3_b":   uniform(ks[9], (10,), 50),
    }


def reference_forward(p, x):
    dn = ("NCHW", "OIHW", "NCHW")
    b = x.shape[0]
    y = lax.conv_general_dilated(x, p["conv1_w"], (1, 1), "VALID",
                                 dimension_numbers=dn)
    y = jax.nn.relu(y + p["conv1_b"][None, :, None, None])
    y = y.reshape(b, 10, 12, 2, 12, 2).max(axis=(3, 5))
    y = lax.conv_general_dilated(y, p["conv2_w"], (1, 1), "VALID",
                                 dimension_numbers=dn)
    y = jax.nn.relu(y + p["conv2_b"][None, :, None, None])
    y = y.reshape(b, 14, 4, 2, 4, 2).max(axis=(3, 5))
    y = y.reshape(b, 224)
    y = jax.nn.relu(y @ p["fc1_w"].T + p["fc1_b"])
    y = jax.nn.relu(y @ p["fc2_w"].T + p["fc2_b"])
    return y @ p["fc3_w"].T + p["fc3_b"]


if __name__ == "__main__":
    key = jax.random.PRNGKey(0)
    pkey, xkey = jax.random.split(key)
    params = init_params(pkey)
    packed = pack_params(params)                       # one-time repack
    x = jax.random.normal(xkey, (2, 1, 28, 28), jnp.float32)

    fwd = jax.jit(net_forward)
    out = jax.block_until_ready(fwd(packed, x))
    assert out.shape == (2, 10) and out.dtype == jnp.float32

    ref = jax.block_until_ready(jax.jit(reference_forward)(params, x))
    # bf16 MXU operands with f32 accumulation: small drift vs the f32 reference.
    assert jnp.allclose(out, ref, rtol=3e-2, atol=3e-2), (out, ref)
    print("KERNEL_OK")
</pallas_src>

<mosaic_0001>
module attributes {stable_mosaic.version = 11 : i64} {
  func.func @_net_kernel(%arg0: i32, %arg1: memref<4x2x7x28xf32, #tpu.memory_space<vmem>>, %arg2: memref<140x256xbf16, #tpu.memory_space<vmem>>, %arg3: memref<1x256xf32, #tpu.memory_space<vmem>>, %arg4: memref<640x256xbf16, #tpu.memory_space<vmem>>, %arg5: memref<1x256xf32, #tpu.memory_space<vmem>>, %arg6: memref<512x320xbf16, #tpu.memory_space<vmem>>, %arg7: memref<1x320xf32, #tpu.memory_space<vmem>>, %arg8: memref<320x50xbf16, #tpu.memory_space<vmem>>, %arg9: memref<1x50xf32, #tpu.memory_space<vmem>>, %arg10: memref<50x10xbf16, #tpu.memory_space<vmem>>, %arg11: memref<1x10xf32, #tpu.memory_space<vmem>>, %arg12: memref<2x10xf32, #tpu.memory_space<vmem>>) attributes {dimension_semantics = [#tpu.dimension_semantics<parallel>], iteration_bounds = array<i64: 1>, scalar_prefetch = 0 : i64, scratch_operands = 0 : i64, tpu.core_type = #tpu.core_type<tc>, window_params = [{transform_indices = @transform_0, window_bounds = array<i64: 4, 2, 7, 28>}, {pipeline_mode = #tpu.pipeline_mode<synchronous>, transform_indices = @transform_1, window_bounds = array<i64: 140, 256>}, {pipeline_mode = #tpu.pipeline_mode<synchronous>, transform_indices = @transform_2, window_bounds = array<i64: 1, 256>}, {pipeline_mode = #tpu.pipeline_mode<synchronous>, transform_indices = @transform_3, window_bounds = array<i64: 640, 256>}, {pipeline_mode = #tpu.pipeline_mode<synchronous>, transform_indices = @transform_4, window_bounds = array<i64: 1, 256>}, {pipeline_mode = #tpu.pipeline_mode<synchronous>, transform_indices = @transform_5, window_bounds = array<i64: 512, 320>}, {pipeline_mode = #tpu.pipeline_mode<synchronous>, transform_indices = @transform_6, window_bounds = array<i64: 1, 320>}, {pipeline_mode = #tpu.pipeline_mode<synchronous>, transform_indices = @transform_7, window_bounds = array<i64: 320, 50>}, {pipeline_mode = #tpu.pipeline_mode<synchronous>, transform_indices = @transform_8, window_bounds = array<i64: 1, 50>}, {pipeline_mode = #tpu.pipeline_mode<synchronous>, transform_indices = @transform_9, window_bounds = array<i64: 50, 10>}, {pipeline_mode = #tpu.pipeline_mode<synchronous>, transform_indices = @transform_10, window_bounds = array<i64: 1, 10>}, {transform_indices = @transform_11, window_bounds = array<i64: 2, 10>}]} {
    %c0 = arith.constant 0 : index
    %c0_0 = arith.constant 0 : index
    %c0_1 = arith.constant 0 : index
    %c0_2 = arith.constant 0 : index
    %0 = vector.load %arg1[%c0, %c0_0, %c0_1, %c0_2] : memref<4x2x7x28xf32, #tpu.memory_space<vmem>>, vector<1x2x7x28xf32>
    %1 = vector.shape_cast %0 : vector<1x2x7x28xf32> to vector<2x7x28xf32>
    %c1 = arith.constant 1 : index
    %c0_3 = arith.constant 0 : index
    %c0_4 = arith.constant 0 : index
    %c0_5 = arith.constant 0 : index
    %2 = vector.load %arg1[%c1, %c0_3, %c0_4, %c0_5] : memref<4x2x7x28xf32, #tpu.memory_space<vmem>>, vector<1x2x7x28xf32>
    %3 = vector.shape_cast %2 : vector<1x2x7x28xf32> to vector<2x7x28xf32>
    %c2 = arith.constant 2 : index
    %c0_6 = arith.constant 0 : index
    %c0_7 = arith.constant 0 : index
    %c0_8 = arith.constant 0 : index
    %4 = vector.load %arg1[%c2, %c0_6, %c0_7, %c0_8] : memref<4x2x7x28xf32, #tpu.memory_space<vmem>>, vector<1x2x7x28xf32>
    %5 = vector.shape_cast %4 : vector<1x2x7x28xf32> to vector<2x7x28xf32>
    %c3 = arith.constant 3 : index
    %c0_9 = arith.constant 0 : index
    %c0_10 = arith.constant 0 : index
    %c0_11 = arith.constant 0 : index
    %6 = vector.load %arg1[%c3, %c0_9, %c0_10, %c0_11] : memref<4x2x7x28xf32, #tpu.memory_space<vmem>>, vector<1x2x7x28xf32>
    %7 = vector.shape_cast %6 : vector<1x2x7x28xf32> to vector<2x7x28xf32>
    %8 = vector.extract_strided_slice %1 {offsets = [0, 0, 0], sizes = [2, 6, 28], strides = [1, 1, 1]} : vector<2x7x28xf32> to vector<2x6x28xf32>
    %9 = vector.extract_strided_slice %3 {offsets = [0, 0, 0], sizes = [2, 6, 28], strides = [1, 1, 1]} : vector<2x7x28xf32> to vector<2x6x28xf32>
    %10 = vector.extract_strided_slice %5 {offsets = [0, 0, 0], sizes = [2, 6, 28], strides = [1, 1, 1]} : vector<2x7x28xf32> to vector<2x6x28xf32>
    %11 = vector.extract_strided_slice %7 {offsets = [0, 0, 0], sizes = [2, 6, 28], strides = [1, 1, 1]} : vector<2x7x28xf32> to vector<2x6x28xf32>
    %12 = vector.extract_strided_slice %1 {offsets = [0, 1, 0], sizes = [2, 6, 28], strides = [1, 1, 1]} : vector<2x7x28xf32> to vector<2x6x28xf32>
    %13 = tpu.concatenate %8, %9, %10, %11, %12 in 2 : vector<2x6x28xf32>, vector<2x6x28xf32>, vector<2x6x28xf32>, vector<2x6x28xf32>, vector<2x6x28xf32> -> vector<2x6x140xf32>
    %14 = vector.shape_cast %13 : vector<2x6x140xf32> to vector<12x140xf32>
    %15 = vector.extract_strided_slice %3 {offsets = [0, 0, 0], sizes = [2, 6, 28], strides = [1, 1, 1]} : vector<2x7x28xf32> to vector<2x6x28xf32>
    %16 = vector.extract_strided_slice %5 {offsets = [0, 0, 0], sizes = [2, 6, 28], strides = [1, 1, 1]} : vector<2x7x28xf32> to vector<2x6x28xf32>
    %17 = vector.extract_strided_slice %7 {offsets = [0, 0, 0], sizes = [2, 6, 28], strides = [1, 1, 1]} : vector<2x7x28xf32> to vector<2x6x28xf32>
    %18 = vector.extract_strided_slice %1 {offsets = [0, 1, 0], sizes = [2, 6, 28], strides = [1, 1, 1]} : vector<2x7x28xf32> to vector<2x6x28xf32>
    %19 = vector.extract_strided_slice %3 {offsets = [0, 1, 0], sizes = [2, 6, 28], strides = [1, 1, 1]} : vector<2x7x28xf32> to vector<2x6x28xf32>
    %20 = tpu.concatenate %15, %16, %17, %18, %19 in 2 : vector<2x6x28xf32>, vector<2x6x28xf32>, vector<2x6x28xf32>, vector<2x6x28xf32>, vector<2x6x28xf32> -> vector<2x6x140xf32>
    %21 = vector.shape_cast %20 : vector<2x6x140xf32> to vector<12x140xf32>
    %22 = vector.extract_strided_slice %5 {offsets = [0, 0, 0], sizes = [2, 6, 28], strides = [1, 1, 1]} : vector<2x7x28xf32> to vector<2x6x28xf32>
    %23 = vector.extract_strided_slice %7 {offsets = [0, 0, 0], sizes = [2, 6, 28], strides = [1, 1, 1]} : vector<2x7x28xf32> to vector<2x6x28xf32>
    %24 = vector.extract_strided_slice %1 {offsets = [0, 1, 0], sizes = [2, 6, 28], strides = [1, 1, 1]} : vector<2x7x28xf32> to vector<2x6x28xf32>
    %25 = vector.extract_strided_slice %3 {offsets = [0, 1, 0], sizes = [2, 6, 28], strides = [1, 1, 1]} : vector<2x7x28xf32> to vector<2x6x28xf32>
    %26 = vector.extract_strided_slice %5 {offsets = [0, 1, 0], sizes = [2, 6, 28], strides = [1, 1, 1]} : vector<2x7x28xf32> to vector<2x6x28xf32>
    %27 = tpu.concatenate %22, %23, %24, %25, %26 in 2 : vector<2x6x28xf32>, vector<2x6x28xf32>, vector<2x6x28xf32>, vector<2x6x28xf32>, vector<2x6x28xf32> -> vector<2x6x140xf32>
    %28 = vector.shape_cast %27 : vector<2x6x140xf32> to vector<12x140xf32>
    %29 = vector.extract_strided_slice %7 {offsets = [0, 0, 0], sizes = [2, 6, 28], strides = [1, 1, 1]} : vector<2x7x28xf32> to vector<2x6x28xf32>
    %30 = vector.extract_strided_slice %1 {offsets = [0, 1, 0], sizes = [2, 6, 28], strides = [1, 1, 1]} : vector<2x7x28xf32> to vector<2x6x28xf32>
    %31 = vector.extract_strided_slice %3 {offsets = [0, 1, 0], sizes = [2, 6, 28], strides = [1, 1, 1]} : vector<2x7x28xf32> to vector<2x6x28xf32>
    %32 = vector.extract_strided_slice %5 {offsets = [0, 1, 0], sizes = [2, 6, 28], strides = [1, 1, 1]} : vector<2x7x28xf32> to vector<2x6x28xf32>
    %33 = vector.extract_strided_slice %7 {offsets = [0, 1, 0], sizes = [2, 6, 28], strides = [1, 1, 1]} : vector<2x7x28xf32> to vector<2x6x28xf32>
    %34 = tpu.concatenate %29, %30, %31, %32, %33 in 2 : vector<2x6x28xf32>, vector<2x6x28xf32>, vector<2x6x28xf32>, vector<2x6x28xf32>, vector<2x6x28xf32> -> vector<2x6x140xf32>
    %35 = vector.shape_cast %34 : vector<2x6x140xf32> to vector<12x140xf32>
    %36 = tpu.concatenate %14, %21, %28, %35 in 0 : vector<12x140xf32>, vector<12x140xf32>, vector<12x140xf32>, vector<12x140xf32> -> vector<48x140xf32>
    %37 = arith.truncf %36 : vector<48x140xf32> to vector<48x140xbf16>
    %c0_12 = arith.constant 0 : index
    %c0_13 = arith.constant 0 : index
    %38 = vector.load %arg2[%c0_12, %c0_13] : memref<140x256xbf16, #tpu.memory_space<vmem>>, vector<140x256xbf16>
    %cst = arith.constant dense<0.000000e+00> : vector<48x256xf32>
    %39 = tpu.matmul %37, %38, %cst {dimension_numbers = #tpu.dot_dimension_numbers<[1], [0], [0], [1], [0, 0, 1, 1], [], []>} : vector<48x140xbf16>, vector<140x256xbf16>, vector<48x256xf32> -> vector<48x256xf32>
    %c0_14 = arith.constant 0 : index
    %c0_15 = arith.constant 0 : index
    %40 = vector.load %arg3[%c0_14, %c0_15] : memref<1x256xf32, #tpu.memory_space<vmem>>, vector<1x256xf32>
    %41 = vector.broadcast %40 : vector<1x256xf32> to vector<48x256xf32>
    %42 = arith.addf %39, %41 : vector<48x256xf32>
    %cst_16 = arith.constant 0.000000e+00 : f32
    %43 = vector.broadcast %cst_16 : f32 to vector<48x256xf32>
    %44 = arith.maximumf %42, %43 : vector<48x256xf32>
    %45 = vector.extract_strided_slice %44 {offsets = [0, 0], sizes = [48, 128], strides = [1, 1]} : vector<48x256xf32> to vector<48x128xf32>
    %46 = vector.extract_strided_slice %44 {offsets = [0, 128], sizes = [48, 128], strides = [1, 1]} : vector<48x256xf32> to vector<48x128xf32>
    %47 = arith.maximumf %45, %46 : vector<48x128xf32>
    %48 = vector.extract_strided_slice %47 {offsets = [0, 0], sizes = [12, 128], strides = [1, 1]} : vector<48x128xf32> to vector<12x128xf32>
    %49 = vector.extract_strided_slice %47 {offsets = [12, 0], sizes = [12, 128], strides = [1, 1]} : vector<48x128xf32> to vector<12x128xf32>
    %50 = arith.maximumf %48, %49 : vector<12x128xf32>
    %51 = vector.extract_strided_slice %47 {offsets = [24, 0], sizes = [12, 128], strides = [1, 1]} : vector<48x128xf32> to vector<12x128xf32>
    %52 = vector.extract_strided_slice %47 {offsets = [36, 0], sizes = [12, 128], strides = [1, 1]} : vector<48x128xf32> to vector<12x128xf32>
    %53 = arith.maximumf %51, %52 : vector<12x128xf32>
    %54 = arith.truncf %50 : vector<12x128xf32> to vector<12x128xbf16>
    %55 = vector.shape_cast %54 : vector<12x128xbf16> to vector<2x6x128xbf16>
    %56 = arith.truncf %53 : vector<12x128xf32> to vector<12x128xbf16>
    %57 = vector.shape_cast %56 : vector<12x128xbf16> to vector<2x6x128xbf16>
    %58 = vector.extract_strided_slice %55 {offsets = [0, 0, 0], sizes = [2, 4, 128], strides = [1, 1, 1]} : vector<2x6x128xbf16> to vector<2x4x128xbf16>
    %59 = vector.extract_strided_slice %57 {offsets = [0, 0, 0], sizes = [2, 4, 128], strides = [1, 1, 1]} : vector<2x6x128xbf16> to vector<2x4x128xbf16>
    %60 = vector.extract_strided_slice %55 {offsets = [0, 1, 0], sizes = [2, 4, 128], strides = [1, 1, 1]} : vector<2x6x128xbf16> to vector<2x4x128xbf16>
    %61 = vector.extract_strided_slice %57 {offsets = [0, 1, 0], sizes = [2, 4, 128], strides = [1, 1, 1]} : vector<2x6x128xbf16> to vector<2x4x128xbf16>
    %62 = vector.extract_strided_slice %55 {offsets = [0, 2, 0], sizes = [2, 4, 128], strides = [1, 1, 1]} : vector<2x6x128xbf16> to vector<2x4x128xbf16>
    %63 = tpu.concatenate %58, %59, %60, %61, %62 in 2 : vector<2x4x128xbf16>, vector<2x4x128xbf16>, vector<2x4x128xbf16>, vector<2x4x128xbf16>, vector<2x4x128xbf16> -> vector<2x4x640xbf16>
    %64 = vector.shape_cast %63 : vector<2x4x640xbf16> to vector<8x640xbf16>
    %65 = vector.extract_strided_slice %57 {offsets = [0, 0, 0], sizes = [2, 4, 128], strides = [1, 1, 1]} : vector<2x6x128xbf16> to vector<2x4x128xbf16>
    %66 = vector.extract_strided_slice %55 {offsets = [0, 1, 0], sizes = [2, 4, 128], strides = [1, 1, 1]} : vector<2x6x128xbf16> to vector<2x4x128xbf16>
    %67 = vector.extract_strided_slice %57 {offsets = [0, 1, 0], sizes = [2, 4, 128], strides = [1, 1, 1]} : vector<2x6x128xbf16> to vector<2x4x128xbf16>
    %68 = vector.extract_strided_slice %55 {offsets = [0, 2, 0], sizes = [2, 4, 128], strides = [1, 1, 1]} : vector<2x6x128xbf16> to vector<2x4x128xbf16>
    %69 = vector.extract_strided_slice %57 {offsets = [0, 2, 0], sizes = [2, 4, 128], strides = [1, 1, 1]} : vector<2x6x128xbf16> to vector<2x4x128xbf16>
    %70 = tpu.concatenate %65, %66, %67, %68, %69 in 2 : vector<2x4x128xbf16>, vector<2x4x128xbf16>, vector<2x4x128xbf16>, vector<2x4x128xbf16>, vector<2x4x128xbf16> -> vector<2x4x640xbf16>
    %71 = vector.shape_cast %70 : vector<2x4x640xbf16> to vector<8x640xbf16>
    %72 = tpu.concatenate %64, %71 in 0 : vector<8x640xbf16>, vector<8x640xbf16> -> vector<16x640xbf16>
    %c0_17 = arith.constant 0 : index
    %c0_18 = arith.constant 0 : index
    %73 = vector.load %arg4[%c0_17, %c0_18] : memref<640x256xbf16, #tpu.memory_space<vmem>>, vector<640x256xbf16>
    %cst_19 = arith.constant dense<0.000000e+00> : vector<16x256xf32>
    %74 = tpu.matmul %72, %73, %cst_19 {dimension_numbers = #tpu.dot_dimension_numbers<[1], [0], [0], [1], [0, 0, 1, 1], [], []>} : vector<16x640xbf16>, vector<640x256xbf16>, vector<16x256xf32> -> vector<16x256xf32>
    %c0_20 = arith.constant 0 : index
    %c0_21 = arith.constant 0 : index
    %75 = vector.load %arg5[%c0_20, %c0_21] : memref<1x256xf32, #tpu.memory_space<vmem>>, vector<1x256xf32>
    %76 = vector.broadcast %75 : vector<1x256xf32> to vector<16x256xf32>
    %77 = arith.addf %74, %76 : vector<16x256xf32>
    %cst_22 = arith.constant 0.000000e+00 : f32
    %78 = vector.broadcast %cst_22 : f32 to vector<16x256xf32>
    %79 = arith.maximumf %77, %78 : vector<16x256xf32>
    %80 = vector.extract_strided_slice %79 {offsets = [0, 0], sizes = [16, 128], strides = [1, 1]} : vector<16x256xf32> to vector<16x128xf32>
    %81 = vector.extract_strided_slice %79 {offsets = [0, 128], sizes = [16, 128], strides = [1, 1]} : vector<16x256xf32> to vector<16x128xf32>
    %82 = arith.maximumf %80, %81 : vector<16x128xf32>
    %83 = vector.extract_strided_slice %82 {offsets = [0, 0], sizes = [8, 128], strides = [1, 1]} : vector<16x128xf32> to vector<8x128xf32>
    %84 = vector.extract_strided_slice %82 {offsets = [8, 0], sizes = [8, 128], strides = [1, 1]} : vector<16x128xf32> to vector<8x128xf32>
    %85 = arith.maximumf %83, %84 : vector<8x128xf32>
    %86 = arith.truncf %85 : vector<8x128xf32> to vector<8x128xbf16>
    %87 = vector.shape_cast %86 : vector<8x128xbf16> to vector<2x4x128xbf16>
    %88 = vector.extract_strided_slice %87 {offsets = [0, 0, 0], sizes = [2, 1, 128], strides = [1, 1, 1]} : vector<2x4x128xbf16> to vector<2x1x128xbf16>
    %89 = vector.shape_cast %88 : vector<2x1x128xbf16> to vector<2x128xbf16>
    %90 = vector.extract_strided_slice %87 {offsets = [0, 1, 0], sizes = [2, 1, 128], strides = [1, 1, 1]} : vector<2x4x128xbf16> to vector<2x1x128xbf16>
    %91 = vector.shape_cast %90 : vector<2x1x128xbf16> to vector<2x128xbf16>
    %92 = vector.extract_strided_slice %87 {offsets = [0, 2, 0], sizes = [2, 1, 128], strides = [1, 1, 1]} : vector<2x4x128xbf16> to vector<2x1x128xbf16>
    %93 = vector.shape_cast %92 : vector<2x1x128xbf16> to vector<2x128xbf16>
    %94 = vector.extract_strided_slice %87 {offsets = [0, 3, 0], sizes = [2, 1, 128], strides = [1, 1, 1]} : vector<2x4x128xbf16> to vector<2x1x128xbf16>
    %95 = vector.shape_cast %94 : vector<2x1x128xbf16> to vector<2x128xbf16>
    %96 = tpu.concatenate %89, %91, %93, %95 in 1 : vector<2x128xbf16>, vector<2x128xbf16>, vector<2x128xbf16>, vector<2x128xbf16> -> vector<2x512xbf16>
    %c0_23 = arith.constant 0 : index
    %c0_24 = arith.constant 0 : index
    %97 = vector.load %arg6[%c0_23, %c0_24] : memref<512x320xbf16, #tpu.memory_space<vmem>>, vector<512x320xbf16>
    %cst_25 = arith.constant dense<0.000000e+00> : vector<2x320xf32>
    %98 = tpu.matmul %96, %97, %cst_25 {dimension_numbers = #tpu.dot_dimension_numbers<[1], [0], [0], [1], [0, 0, 1, 1], [], []>} : vector<2x512xbf16>, vector<512x320xbf16>, vector<2x320xf32> -> vector<2x320xf32>
    %c0_26 = arith.constant 0 : index
    %c0_27 = arith.constant 0 : index
    %99 = vector.load %arg7[%c0_26, %c0_27] : memref<1x320xf32, #tpu.memory_space<vmem>>, vector<1x320xf32>
    %100 = vector.broadcast %99 : vector<1x320xf32> to vector<2x320xf32>
    %101 = arith.addf %98, %100 : vector<2x320xf32>
    %cst_28 = arith.constant 0.000000e+00 : f32
    %102 = vector.broadcast %cst_28 : f32 to vector<2x320xf32>
    %103 = arith.maximumf %101, %102 : vector<2x320xf32>
    %104 = arith.truncf %103 : vector<2x320xf32> to vector<2x320xbf16>
    %c0_29 = arith.constant 0 : index
    %c0_30 = arith.constant 0 : index
    %105 = vector.load %arg8[%c0_29, %c0_30] : memref<320x50xbf16, #tpu.memory_space<vmem>>, vector<320x50xbf16>
    %cst_31 = arith.constant dense<0.000000e+00> : vector<2x50xf32>
    %106 = tpu.matmul %104, %105, %cst_31 {dimension_numbers = #tpu.dot_dimension_numbers<[1], [0], [0], [1], [0, 0, 1, 1], [], []>} : vector<2x320xbf16>, vector<320x50xbf16>, vector<2x50xf32> -> vector<2x50xf32>
    %c0_32 = arith.constant 0 : index
    %c0_33 = arith.constant 0 : index
    %107 = vector.load %arg9[%c0_32, %c0_33] : memref<1x50xf32, #tpu.memory_space<vmem>>, vector<1x50xf32>
    %108 = vector.broadcast %107 : vector<1x50xf32> to vector<2x50xf32>
    %109 = arith.addf %106, %108 : vector<2x50xf32>
    %cst_34 = arith.constant 0.000000e+00 : f32
    %110 = vector.broadcast %cst_34 : f32 to vector<2x50xf32>
    %111 = arith.maximumf %109, %110 : vector<2x50xf32>
    %112 = arith.truncf %111 : vector<2x50xf32> to vector<2x50xbf16>
    %c0_35 = arith.constant 0 : index
    %c0_36 = arith.constant 0 : index
    %113 = vector.load %arg10[%c0_35, %c0_36] : memref<50x10xbf16, #tpu.memory_space<vmem>>, vector<50x10xbf16>
    %cst_37 = arith.constant dense<0.000000e+00> : vector<2x10xf32>
    %114 = tpu.matmul %112, %113, %cst_37 {dimension_numbers = #tpu.dot_dimension_numbers<[1], [0], [0], [1], [0, 0, 1, 1], [], []>} : vector<2x50xbf16>, vector<50x10xbf16>, vector<2x10xf32> -> vector<2x10xf32>
    %c0_38 = arith.constant 0 : index
    %c0_39 = arith.constant 0 : index
    %115 = vector.load %arg11[%c0_38, %c0_39] : memref<1x10xf32, #tpu.memory_space<vmem>>, vector<1x10xf32>
    %116 = vector.broadcast %115 : vector<1x10xf32> to vector<2x10xf32>
    %117 = arith.addf %114, %116 : vector<2x10xf32>
    %c0_40 = arith.constant 0 : index
    %c0_41 = arith.constant 0 : index
    %118 = vector.load %arg12[%c0_40, %c0_41] : memref<2x10xf32, #tpu.memory_space<vmem>>, vector<2x10xf32>
    tpu.vector_store %arg12[%c0_40, %c0_41], %117 {strides = array<i32>} : memref<2x10xf32, #tpu.memory_space<vmem>>, vector<2x10xf32>,
    return
  }
  func.func @transform_0(%arg0: i32) -> (i32, i32, i32, i32) {
    %c0_i32 = arith.constant 0 : i32
    %c0_i32_0 = arith.constant 0 : i32
    %c0_i32_1 = arith.constant 0 : i32
    %c0_i32_2 = arith.constant 0 : i32
    return %c0_i32, %arg0, %c0_i32_0, %c0_i32_1 : i32, i32, i32, i32
  }
  func.func @transform_1(%arg0: i32) -> (i32, i32) {
    %c0_i32 = arith.constant 0 : i32
    %c0_i32_0 = arith.constant 0 : i32
    %c0_i32_1 = arith.constant 0 : i32
    return %c0_i32, %c0_i32_0 : i32, i32
  }
  func.func @transform_2(%arg0: i32) -> (i32, i32) {
    %c0_i32 = arith.constant 0 : i32
    %c0_i32_0 = arith.constant 0 : i32
    %c0_i32_1 = arith.constant 0 : i32
    return %c0_i32, %c0_i32_0 : i32, i32
  }
  func.func @transform_3(%arg0: i32) -> (i32, i32) {
    %c0_i32 = arith.constant 0 : i32
    %c0_i32_0 = arith.constant 0 : i32
    %c0_i32_1 = arith.constant 0 : i32
    return %c0_i32, %c0_i32_0 : i32, i32
  }
  func.func @transform_4(%arg0: i32) -> (i32, i32) {
    %c0_i32 = arith.constant 0 : i32
    %c0_i32_0 = arith.constant 0 : i32
    %c0_i32_1 = arith.constant 0 : i32
    return %c0_i32, %c0_i32_0 : i32, i32
  }
  func.func @transform_5(%arg0: i32) -> (i32, i32) {
    %c0_i32 = arith.constant 0 : i32
    %c0_i32_0 = arith.constant 0 : i32
    %c0_i32_1 = arith.constant 0 : i32
    return %c0_i32, %c0_i32_0 : i32, i32
  }
  func.func @transform_6(%arg0: i32) -> (i32, i32) {
    %c0_i32 = arith.constant 0 : i32
    %c0_i32_0 = arith.constant 0 : i32
    %c0_i32_1 = arith.constant 0 : i32
    return %c0_i32, %c0_i32_0 : i32, i32
  }
  func.func @transform_7(%arg0: i32) -> (i32, i32) {
    %c0_i32 = arith.constant 0 : i32
    %c0_i32_0 = arith.constant 0 : i32
    %c0_i32_1 = arith.constant 0 : i32
    return %c0_i32, %c0_i32_0 : i32, i32
  }
  func.func @transform_8(%arg0: i32) -> (i32, i32) {
    %c0_i32 = arith.constant 0 : i32
    %c0_i32_0 = arith.constant 0 : i32
    %c0_i32_1 = arith.constant 0 : i32
    return %c0_i32, %c0_i32_0 : i32, i32
  }
  func.func @transform_9(%arg0: i32) -> (i32, i32) {
    %c0_i32 = arith.constant 0 : i32
    %c0_i32_0 = arith.constant 0 : i32
    %c0_i32_1 = arith.constant 0 : i32
    return %c0_i32, %c0_i32_0 : i32, i32
  }
  func.func @transform_10(%arg0: i32) -> (i32, i32) {
    %c0_i32 = arith.constant 0 : i32
    %c0_i32_0 = arith.constant 0 : i32
    %c0_i32_1 = arith.constant 0 : i32
    return %c0_i32, %c0_i32_0 : i32, i32
  }
  func.func @transform_11(%arg0: i32) -> (i32, i32) {
    %c0_i32 = arith.constant 0 : i32
    %c0_i32_0 = arith.constant 0 : i32
    return %arg0, %c0_i32 : i32, i32
  }
}

</mosaic_0001>

<bundles_post_ra>
// kernel: net_forward.1
= control target key start
LH: loop header
LB: loop body
LE: loop exit
PB: predicated region body
PF: predicated region fallthrough
CT: control target
= control target key end

     0   :  { %s3791_s21 = smov 28   ;;  %s5564_s0 = inlined_call_operand.vmem [shape: f32[4,2,7,28], index: 0, kind: input, shape index: {}]   ;;  %s5565_s1 = inlined_call_operand.vmem [shape: bf16[140,256], index: 1, kind: input, shape index: {}]   ;;  %s5566_s2 = inlined_call_operand.vmem [shape: f32[1,256], index: 2, kind: input, shape index: {}]   ;;  %s5567_s3 = inlined_call_operand.vmem [shape: bf16[640,256], index: 3, kind: input, shape index: {}]   ;;  %s5568_s4 = inlined_call_operand.vmem [shape: f32[1,256], index: 4, kind: input, shape index: {}]   ;;  %s5569_s5 = inlined_call_operand.vmem [shape: bf16[512,320], index: 5, kind: input, shape index: {}]   ;;  %s5570_s6 = inlined_call_operand.vmem [shape: f32[1,320], index: 6, kind: input, shape index: {}]   ;;  %s5571_s7 = inlined_call_operand.vmem [shape: bf16[320,50], index: 7, kind: input, shape index: {}]   ;;  %s5572_s8 = inlined_call_operand.vmem [shape: f32[1,50], index: 8, kind: input, shape index: {}]   ;;  %s5573_s9 = inlined_call_operand.vmem [shape: bf16[50,10], index: 9, kind: input, shape index: {}]   ;;  %s5574_s10 = inlined_call_operand.vmem [shape: f32[1,10], index: 10, kind: input, shape index: {}]   ;;  %s5575_s11 = inlined_call_operand.hbm [shape: f32[2,10], index: 11, kind: output, shape index: {}]  }
   0x1   :  { %v3859_v0 = vld [vmem:[%s5564_s0 + $0x18] sm:$0x7f]  ;;  %v3864_v1 = vld [vmem:[%s5564_s0 + $0x10] sm:$0x7f]  ;;  %v3873_v2 = vld [vmem:[%s5564_s0] sm:$0x7f] }
   0x2   :  { %55 = vrot.lane.b32.xlu1 %v3859_v0, %s3791_s21  ;;  %53 = vrot.lane.b32.xlu0 %v3864_v1, %s3791_s21  ;;  %v77_v3 = vrot.slane %v3873_v2, 1 }
   0x3   :  { %16 = vsyncpa [#allocation3], 0  ;;  %s3792_s24 = smov 112   ;;  %v3880_v4 = vld [vmem:[%s5564_s0 + $0x30] sm:$0x7f]  ;;  %s3793_s29 = smov 84  }
   0x4   :  { %79 = vrot.lane.b32.xlu2 %v77_v3, %s3792_s24  ;;  %v3885_v5 = vld [vmem:[%s5564_s0 + $0x20] sm:$0x7f]  ;;  %s3794_s30 = smov 56   ;;  %v3894_v6 = vld [vmem:[%s5564_s0 + $0x8] sm:$0x7f]  ;;  %v132_v10 = vrot.slane %v3864_v1, 1 }
   0x5   :  { %v3899_v7 = vld [vmem:[%s5564_s0 + $0x28] sm:$0x7f]  ;;  %v78_v8 = vrot.slane %v3894_v6, 1  ;;  %v3907_v9 = vld [vmem:[%s5564_s0 + $0x38] sm:$0x7f]  ;;  %v133_v11 = vrot.slane %v3859_v0, 1 }
   0x6   :  { %v180_v12 = vrot.slane %v3885_v5, 1  ;;  %v181_v13 = vrot.slane %v3899_v7, 1  ;;  %v228_v14 = vrot.slane %v3880_v4, 1  ;;  %v229_v15 = vrot.slane %v3907_v9, 1  ;;  %v2723_v16 = vld [vmem:[%s5565_s1 + $0x70] sm:$0xf] }
   0x7   :  { %v3556_v17 = vld [vmem:[%s5565_s1 + $0x74] sm:$0xf0]  ;;  %v3555_v19 = vld [vmem:[%s5565_s1 + $0x74] sm:$0xf]  ;;  %v2725_v20 = vld [vmem:[%s5565_s1 + $0x78] sm:$0xf0] }
   0x8   :  { %v2724_v18 = vor.u32 %v3556_v17, %v2723_v16  ;;  %v2728_v21 = vor.u32 %v3555_v19, %v2725_v20  ;;  %v2715_v23 = vld [vmem:[%s5565_s1 + $0x60] sm:$0xf]  ;;  %v3554_v24 = vld [vmem:[%s5565_s1 + $0x64] sm:$0xf0]  ;;  %v3553_v26 = vld [vmem:[%s5565_s1 + $0x64] sm:$0xf] }
   0x9   :  { %v2716_v25 = vor.u32 %v3554_v24, %v2715_v23  ;;  %v2717_v27 = vld [vmem:[%s5565_s1 + $0x68] sm:$0xf0]  ;;  %v2707_v29 = vld [vmem:[%s5565_s1 + $0x50] sm:$0xf]  ;;  %v3552_v30 = vld [vmem:[%s5565_s1 + $0x54] sm:$0xf0] }
   0xa   :  { %69 = vrot.lane.b32.xlu1 %v3880_v4, %s3793_s29  ;;  %61 = vrot.lane.b32.xlu0 %v3885_v5, %s3794_s30  ;;  %v2720_v28 = vor.u32 %v3553_v26, %v2717_v27  ;;  %v3551_v31 = vld [vmem:[%s5565_s1 + $0x54] sm:$0xf]  ;;  %v2708_v32 = vor.u32 %v3552_v30, %v2707_v29  ;;  %v2709_v33 = vld [vmem:[%s5565_s1 + $0x58] sm:$0xf0]  ;;  %vm85_vm0 = vcmask 228352   ;;  %vm469_vm1 = vcmask 1045504  }
   0xb   :  { %476 = vmatpush.bf16.msra.mxu0 %v2724_v18  ;;  %524 = vmatpush.bf16.msra.mxu2 %v2728_v21  ;;  %v2712_v34 = vor.u32 %v3551_v31, %v2709_v33  ;;  %v2699_v36 = vld [vmem:[%s5565_s1 + $0x40] sm:$0xf]  ;;  %v3550_v37 = vld [vmem:[%s5565_s1 + $0x44] sm:$0xf0]  ;;  %v3549_v38 = vld [vmem:[%s5565_s1 + $0x44] sm:$0xf] }
   0xc   :  { %63 = vrot.lane.b32.xlu2 %v3899_v7, %s3794_s30  ;;  %v2700_v39 = vor.u32 %v3550_v37, %v2699_v36  ;;  %v2701_v40 = vld [vmem:[%s5565_s1 + $0x48] sm:$0xf0]  ;;  %v2691_v42 = vld [vmem:[%s5565_s1 + $0x30] sm:$0xf]  ;;  %v3548_v43 = vld [vmem:[%s5565_s1 + $0x34] sm:$0xf0] }
   0xd   :  { %v2704_v41 = vor.u32 %v3549_v38, %v2701_v40  ;;  %v3547_v44 = vld [vmem:[%s5565_s1 + $0x34] sm:$0xf]  ;;  %v2692_v45 = vor.u32 %v3548_v43, %v2691_v42  ;;  %v2693_v46 = vld [vmem:[%s5565_s1 + $0x38] sm:$0xf0]  ;;  %v2683_v49 = vld [vmem:[%s5565_s1 + $0x20] sm:$0xf] }
   0xe   :  { %v2696_v47 = vor.u32 %v3547_v44, %v2693_v46  ;;  %v3546_v50 = vld [vmem:[%s5565_s1 + $0x24] sm:$0xf0]  ;;  %v3545_v51 = vld [vmem:[%s5565_s1 + $0x24] sm:$0xf]  ;;  %v2685_v53 = vld [vmem:[%s5565_s1 + $0x28] sm:$0xf0] }
   0xf   :  { %477 = vmatpush.bf16.msra.mxu0 %v2716_v25  ;;  %525 = vmatpush.bf16.msra.mxu2 %v2720_v28  ;;  %v2684_v52 = vor.u32 %v3546_v50, %v2683_v49  ;;  %v2688_v54 = vor.u32 %v3545_v51, %v2685_v53  ;;  %v2675_v57 = vld [vmem:[%s5565_s1 + $0x10] sm:$0xf]  ;;  %v3544_v58 = vld [vmem:[%s5565_s1 + $0x14] sm:$0xf0]  ;;  %v3543_v59 = vld [vmem:[%s5565_s1 + $0x14] sm:$0xf] }
  0x10   :  { %v2676_v60 = vor.u32 %v3544_v58, %v2675_v57  ;;  %v2677_v61 = vld [vmem:[%s5565_s1 + $0x18] sm:$0xf0]  ;;  %v2731_v63 = vld [vmem:[%s5565_s1 + $0x80] sm:$0xf]  ;;  %vm91_vm2 = vcmask 687104   ;;  %vm88_vm3 = vcmask 457728  }
  0x11   :  { %v2680_v62 = vor.u32 %v3543_v59, %v2677_v61  ;;  %v2733_v19 = vld [vmem:[%s5565_s1 + $0x88] sm:$0x30]  ;;  %vm94_vm4 = vcmask 916480   ;;  %vm101_vm5 = vcmask 1041408   ;;  %vm103_vm6 = vcmask 1043458  }
  0x12   :  { %71 = vrot.lane.b32.xlu0 %v3907_v9, %s3793_s29  ;;  %81 = vrot.lane.b32.xlu1 %v78_v8, %s3792_s24  ;;  %vm106_vm7 = vcmask 1045508   ;;  %vm336_vm8 = vcmask 1043456   ;;  %vm459_vm9 = vcmask 97280   ;;  %vm614_vm10 = vcmask 1040384  }
  0x13   :  { %478 = vmatpush.bf16.msra.mxu0 %v2708_v32  ;;  %526 = vmatpush.bf16.msra.mxu2 %v2712_v34  ;;  %vm618_vm11 = vcmask 1041409   ;;  %vm626_vm12 = vcmask 1043459   ;;  %vm622_vm13 = vcmask 1042434   ;;  %vm2544_vm14 = vcmask 523264  }
  0x14   :  { %114 = vrot.lane.b32.xlu2 %v3885_v5, %s3791_s21  ;;  %vm2621_vm15 = vcmask 408576  }
  0x17   :  { %479 = vmatpush.bf16.msra.mxu0 %v2700_v39  ;;  %527 = vmatpush.bf16.msra.mxu2 %v2704_v41 }
  0x1a   :  { %120 = vrot.lane.b32.xlu0 %v3880_v4, %s3794_s30  ;;  %126 = vrot.lane.b32.xlu1 %v77_v3, %s3793_s29 }
  0x1b   :  { %480 = vmatpush.bf16.msra.mxu0 %v2692_v45  ;;  %528 = vmatpush.bf16.msra.mxu2 %v2696_v47 }
  0x1c   :  { %134 = vrot.lane.b32.xlu2 %v132_v10, %s3792_s24 }
  0x1f   :  { %481 = vmatpush.bf16.msra.mxu0 %v2684_v52  ;;  %529 = vmatpush.bf16.msra.mxu2 %v2688_v54 }
  0x22   :  { %116 = vrot.lane.b32.xlu0 %v3899_v7, %s3791_s21  ;;  %162 = vrot.lane.b32.xlu1 %v3880_v4, %s3791_s21 }
  0x23   :  { %482 = vmatpush.bf16.msra.mxu0 %v2676_v60  ;;  %530 = vmatpush.bf16.msra.mxu2 %v2680_v62 }
  0x24   :  { %122 = vrot.lane.b32.xlu2 %v3907_v9, %s3794_s30 }
  0x2a   :  { %168 = vrot.lane.b32.xlu0 %v77_v3, %s3794_s30  ;;  %128 = vrot.lane.b32.xlu1 %v78_v8, %s3793_s29 }
  0x2c   :  { %136 = vrot.lane.b32.xlu2 %v133_v11, %s3792_s24 }
  0x32   :  { %164 = vrot.lane.b32.xlu0 %v3907_v9, %s3791_s21  ;;  %174 = vrot.lane.b32.xlu1 %v132_v10, %s3793_s29 }
  0x34   :  { %182 = vrot.lane.b32.xlu2 %v180_v12, %s3792_s24 }
  0x3a   :  { %170 = vrot.lane.b32.xlu0 %v78_v8, %s3794_s30  ;;  %176 = vrot.lane.b32.xlu1 %v133_v11, %s3793_s29 }
  0x3c   :  { %184 = vrot.lane.b32.xlu2 %v181_v13, %s3792_s24 }
  0x42   :  { %210 = vrot.lane.b32.xlu0 %v77_v3, %s3791_s21  ;;  %212 = vrot.lane.b32.xlu1 %v78_v8, %s3791_s21  ;;  %v3558_v3 = vld [vmem:[%s5565_s1 + $0x84] sm:$0x30]  ;;  %v2667_v8 = vld [vmem:[%s5565_s1] sm:$0xf] }
  0x44   :  { %216 = vrot.lane.b32.xlu2 %v132_v10, %s3794_s30  ;;  %v3542_v10 = vld [vmem:[%s5565_s1 + $0x4] sm:$0xf0] }
  0x4a   :  { %218 = vrot.lane.b32.xlu0 %v133_v11, %s3794_s30  ;;  %222 = vrot.lane.b32.xlu1 %v180_v12, %s3793_s29  ;;  %v2732_v11 = vor.u32 %v3558_v3, %v2731_v63  ;;  %v3557_v12 = vld [vmem:[%s5565_s1 + $0x84] sm:$0xf] }
  0x4b   :  { %v2736_v24 = vor.u32 %v3557_v12, %v2733_v19 }
  0x4c   :  { %230 = vrot.lane.b32.xlu2 %v228_v14, %s3792_s24  ;;  %v3541_v14 = vld [vmem:[%s5565_s1 + $0x4] sm:$0xf]  ;;  %v471_v17 = vsel %vm469_vm1, %v2732_v11, 0 }
  0x4d   :  { %507 = vmatpush.bf16.msra.mxu1 %v471_v17  ;;  %v474_v28 = vsel %vm469_vm1, %v2736_v24, 0 }
  0x4e   :  { %555 = vmatpush.bf16.msra.mxu3 %v474_v28 }
  0x52   :  { %224 = vrot.lane.b32.xlu0 %v181_v13, %s3793_s29  ;;  %232 = vrot.lane.b32.xlu1 %v229_v15, %s3792_s24  ;;  %v2668_v13 = vor.u32 %v3542_v10, %v2667_v8  ;;  %v2669_v15 = vld [vmem:[%s5565_s1 + $0x8] sm:$0xf0] }
  0x53   :  { %v2672_v18 = vor.u32 %v3541_v14, %v2669_v15 }
  0x54   :  { %483 = vmatpush.bf16.msra.mxu0 %v2668_v13 }
  0x55   :  { %531 = vmatpush.bf16.msra.mxu2 %v2672_v18 }
  0x5e   :  { %v3960_v22 = vpop.permute.xlu2 %79 }
  0x5f   :  { %v99_v26 = vrot.slane %v3960_v22, 6 }
  0x66   :  { %v3986_v35 = vpop.permute.xlu2 %63 }
  0x6e   :  { %v4012_v48 = vpop.permute.xlu2 %114 }
  0x74   :  { %v56_v55 = vpop.permute.xlu1 %55  ;;  %v54_v56 = vpop.permute.xlu0 %53 }
  0x75   :  { %v86_v20 = vsel %vm85_vm0, %v3873_v2, %v54_v56  ;;  %v87_v32 = vsel %vm85_vm0, %v3894_v6, %v56_v55 }
  0x76   :  { %v135_v16 = vpop.permute.xlu2 %134  ;;  %v90_v36 = vsel %vm88_vm3, %v87_v32, %v3986_v35  ;;  %v140_v35 = vsel %vm85_vm0, %v3864_v1, %v4012_v48 }
  0x77   :  { %v150_v49 = vrot.slane %v135_v16, 6 }
  0x7c   :  { %v70_v21 = vpop.permute.xlu1 %69  ;;  %v62_v23 = vpop.permute.xlu0 %61 }
  0x7d   :  { %v89_v25 = vsel %vm88_vm3, %v86_v20, %v62_v23 }
  0x7e   :  { %v92_v27 = vsel %vm91_vm2, %v89_v25, %v70_v21  ;;  %v123_v40 = vpop.permute.xlu2 %122 }
  0x7f   :  { %v95_v2 = vsel %vm94_vm4, %v92_v27, %v3960_v22 }
  0x80   :  { %v102_v29 = vsel %vm101_vm5, %v95_v2, %v99_v26  ;;  %v104_v30 = vsel %vm103_vm6, %v95_v2, %v99_v26  ;;  %v107_v31 = vsel %vm106_vm7, %v95_v2, %v99_v26 }
  0x81   :  { %v105_v33 = vrot.slane %v104_v30, 2  ;;  %v108_v34 = vrot.slane %v107_v31, 4  ;;  %258 = vst [vmem:[#allocation1] ss:$4 sm:$0xff] %v102_v29 }
  0x83   :  { %260 = vst [vmem:[#allocation1 + $0x1] ss:$4 sm:$0xff] %v105_v33 }
  0x84   :  { %262 = vst [vmem:[#allocation1 + $0x2] ss:$4 sm:$0xff] %v108_v34  ;;  %v72_v37 = vpop.permute.xlu0 %71  ;;  %v82_v22 = vpop.permute.xlu1 %81 }
  0x85   :  { %v93_v38 = vsel %vm91_vm2, %v90_v36, %v72_v37  ;;  %v100_v39 = vrot.slane %v82_v22, 6 }
  0x86   :  { %v96_v41 = vsel %vm94_vm4, %v93_v38, %v82_v22  ;;  %v137_v55 = vpop.permute.xlu2 %136 }
  0x87   :  { %v109_v42 = vsel %vm101_vm5, %v96_v41, %v100_v39  ;;  %v110_v6 = vsel %vm103_vm6, %v96_v41, %v100_v39  ;;  %v112_v43 = vsel %vm106_vm7, %v96_v41, %v100_v39  ;;  %v151_v11 = vrot.slane %v137_v55, 6 }
  0x88   :  { %v111_v44 = vrot.slane %v110_v6, 2  ;;  %v113_v45 = vrot.slane %v112_v43, 4  ;;  %264 = vst [vmem:[#allocation1 + $0x3] ss:$4 sm:$0xff] %v109_v42 }
  0x8a   :  { %266 = vst [vmem:[#allocation1 + $0x20] ss:$4 sm:$0xff] %v111_v44 }
  0x8b   :  { %268 = vst [vmem:[#allocation1 + $0x21] ss:$4 sm:$0xff] %v113_v45 }
  0x8c   :  { %v121_v46 = vpop.permute.xlu0 %120  ;;  %v127_v47 = vpop.permute.xlu1 %126 }
  0x8d   :  { %v142_v50 = vsel %vm88_vm3, %v140_v35, %v121_v46 }
  0x8e   :  { %v144_v51 = vsel %vm91_vm2, %v142_v50, %v127_v47  ;;  %v183_v3 = vpop.permute.xlu2 %182 }
  0x8f   :  { %v269_v52 = vld.sshfl [vmem:[#allocation1] sm:$0xff pattern:$0x73625140]  ;;  %v270_v53 = vld.sshfl [vmem:[#allocation1 + $0x8] sm:$0xff pattern:$0x73625140]  ;;  %v146_v54 = vsel %vm94_vm4, %v144_v51, %v135_v16 }
  0x90   :  { %v152_v56 = vsel %vm101_vm5, %v146_v54, %v150_v49  ;;  %v153_v57 = vsel %vm103_vm6, %v146_v54, %v150_v49  ;;  %v155_v58 = vsel %vm106_vm7, %v146_v54, %v150_v49  ;;  %v198_v27 = vrot.slane %v183_v3, 6 }
  0x91   :  { %v154_v1 = vrot.slane %v153_v57, 2  ;;  %v156_v48 = vrot.slane %v155_v58, 4  ;;  %278 = vst [vmem:[#allocation1 + $0x2] ss:$4 sm:$0xff] %v152_v56 }
  0x92   :  { %v271_v59 = vld.sshfl [vmem:[#allocation1 + $0x20] sm:$0xff pattern:$0x73625140]  ;;  %v272_v60 = vld.sshfl [vmem:[#allocation1 + $0x28] sm:$0xff pattern:$0x73625140] }
  0x93   :  { %280 = vst [vmem:[#allocation1 + $0x3] ss:$4 sm:$0xff] %v154_v1 }
  0x94   :  { %282 = vst [vmem:[#allocation1 + $0x20] ss:$4 sm:$0xff] %v156_v48  ;;  %v117_v61 = vpop.permute.xlu0 %116  ;;  %v163_v62 = vpop.permute.xlu1 %162 }
  0x95   :  { %v141_v63 = vsel %vm85_vm0, %v3859_v0, %v117_v61  ;;  %v188_v26 = vsel %vm85_vm0, %v3885_v5, %v163_v62 }
  0x96   :  { %v143_v14 = vsel %vm88_vm3, %v141_v63, %v123_v40  ;;  %v185_v28 = vpop.permute.xlu2 %184 }
  0x97   :  { %v199_v40 = vrot.slane %v185_v28, 6 }
  0x9a   :  { %v289_v8 = vld.sshfl [vmem:[#allocation1] sm:$0xff pattern:$0x73625140]  ;;  %v290_v10 = vld.sshfl [vmem:[#allocation1 + $0x8] sm:$0xff pattern:$0x73625140] }
  0x9b   :  { %v337_v12 = vsel %vm336_vm8, %v271_v59, %v289_v8  ;;  %v338_v13 = vsel %vm336_vm8, %v272_v60, %v290_v10 }
  0x9c   :  { %v169_v15 = vpop.permute.xlu0 %168  ;;  %v129_v16 = vpop.permute.xlu1 %128  ;;  %v341_v17 = vpack.c.bf16 %v337_v12, %v269_v52  ;;  %v342_v18 = vpack.c.bf16 %v338_v13, %v270_v53 }
  0x9d   :  { %v145_v19 = vsel %vm91_vm2, %v143_v14, %v129_v16  ;;  %v190_v2 = vsel %vm88_vm3, %v188_v26, %v169_v15 }
  0x9e   :  { %v147_v20 = vsel %vm94_vm4, %v145_v19, %v137_v55  ;;  %484 = vmatmul.bf16.vlgmr.msra.gmra.mxu0 %v341_v17  ;;  %2737 = vmatmul.msk.bf16.vlgmr.msra.gmra.mxu1 %vm459_vm9, %v342_v18  ;;  %v217_v6 = vpop.permute.xlu2 %216 }
  0x9f   :  { %v157_v0 = vsel %vm101_vm5, %v147_v20, %v151_v11  ;;  %v158_v21 = vsel %vm103_vm6, %v147_v20, %v151_v11  ;;  %v160_v23 = vsel %vm106_vm7, %v147_v20, %v151_v11  ;;  %532 = vmatmul.bf16.vlgmr.msra.gmra.mxu2 %v341_v17  ;;  %2740 = vmatmul.msk.bf16.vlgmr.msra.gmra.mxu3 %vm459_vm9, %v342_v18 }
  0xa0   :  { %v159_v24 = vrot.slane %v158_v21, 2  ;;  %v161_v25 = vrot.slane %v160_v23, 4  ;;  %284 = vst [vmem:[#allocation1 + $0x21] ss:$4 sm:$0xff] %v157_v0 }
  0xa2   :  { %286 = vst [vmem:[#allocation1 + $0x22] ss:$4 sm:$0xff] %v159_v24 }
  0xa3   :  { %288 = vst [vmem:[#allocation1 + $0x23] ss:$4 sm:$0xff] %v161_v25 }
  0xa4   :  { %v165_v29 = vpop.permute.xlu0 %164  ;;  %v175_v30 = vpop.permute.xlu1 %174 }
  0xa5   :  { %v192_v31 = vsel %vm91_vm2, %v190_v2, %v175_v30  ;;  %v189_v5 = vsel %vm85_vm0, %v3899_v7, %v165_v29 }
  0xa6   :  { %v194_v32 = vsel %vm94_vm4, %v192_v31, %v183_v3  ;;  %v231_v54 = vpop.permute.xlu2 %230 }
  0xa7   :  { %v200_v33 = vsel %vm101_vm5, %v194_v32, %v198_v27  ;;  %v201_v34 = vsel %vm103_vm6, %v194_v32, %v198_v27  ;;  %v203_v36 = vsel %vm106_vm7, %v194_v32, %v198_v27  ;;  %v246_v58 = vrot.slane %v231_v54, 6 }
  0xa8   :  { %v202_v37 = vrot.slane %v201_v34, 2  ;;  %v204_v22 = vrot.slane %v203_v36, 4  ;;  %297 = vst [vmem:[#allocation1] ss:$4 sm:$0xff] %v200_v33  ;;  %v365_v36 = vld [vmem:[%s5566_s2] sm:$0x3] }
  0xaa   :  { %299 = vst [vmem:[#allocation1 + $0x1] ss:$4 sm:$0xff] %v202_v37  ;;  %v291_v7 = vld.sshfl [vmem:[#allocation1 + $0x20] sm:$0xff pattern:$0x73625140] }
  0xab   :  { %301 = vst [vmem:[#allocation1 + $0x2] ss:$4 sm:$0xff] %v204_v22  ;;  %v292_v49 = vld.sshfl [vmem:[#allocation1 + $0x28] sm:$0xff pattern:$0x73625140]  ;;  %v4145_v22 = vperm.slane %v365_v36, 1 }
  0xac   :  { %v171_v38 = vpop.permute.xlu0 %170  ;;  %v177_v39 = vpop.permute.xlu1 %176 }
  0xad   :  { %v191_v41 = vsel %vm88_vm3, %v189_v5, %v171_v38  ;;  %v4147_v38 = vperm.slane %v365_v36, 0 }
  0xae   :  { %v193_v42 = vsel %vm91_vm2, %v191_v41, %v177_v39 }
  0xaf   :  { %v195_v43 = vsel %vm94_vm4, %v193_v42, %v185_v28 }
  0xb0   :  { %v205_v44 = vsel %vm101_vm5, %v195_v43, %v199_v40  ;;  %v206_v45 = vsel %vm103_vm6, %v195_v43, %v199_v40  ;;  %v208_v35 = vsel %vm106_vm7, %v195_v43, %v199_v40 }
  0xb1   :  { %v207_v46 = vrot.slane %v206_v45, 2  ;;  %v209_v47 = vrot.slane %v208_v35, 4  ;;  %303 = vst [vmem:[#allocation1 + $0x3] ss:$4 sm:$0xff] %v205_v44 }
  0xb3   :  { %305 = vst [vmem:[#allocation1 + $0x20] ss:$4 sm:$0xff] %v207_v46 }
  0xb4   :  { %307 = vst [vmem:[#allocation1 + $0x21] ss:$4 sm:$0xff] %v209_v47  ;;  %v211_v50 = vpop.permute.xlu0 %210  ;;  %v213_v51 = vpop.permute.xlu1 %212 }
  0xb5   :  { %v236_v55 = vsel %vm85_vm0, %v3880_v4, %v211_v50  ;;  %v237_v12 = vsel %vm85_vm0, %v3907_v9, %v213_v51  ;;  %vm2641_vm0 = vcmask 74752  }
  0xb6   :  { %v238_v1 = vsel %vm88_vm3, %v236_v55, %v217_v6 }
  0xb8   :  { %v308_v52 = vld.sshfl [vmem:[#allocation1] sm:$0xff pattern:$0x73625140]  ;;  %v309_v53 = vld.sshfl [vmem:[#allocation1 + $0x8] sm:$0xff pattern:$0x73625140] }
  0xb9   :  { %v343_v56 = vpack.c.bf16 %v308_v52, %v291_v7  ;;  %v344_v57 = vpack.c.bf16 %v309_v53, %v292_v49 }
  0xbb   :  { %489 = vmatmul.bf16.gmra.mxu0 %v343_v56  ;;  %2738 = vmatmul.msk.bf16.gmra.mxu1 %vm459_vm9, %v344_v57  ;;  %v310_v10 = vld.sshfl [vmem:[#allocation1 + $0x20] sm:$0xff pattern:$0x73625140]  ;;  %v311_v11 = vld.sshfl [vmem:[#allocation1 + $0x28] sm:$0xff pattern:$0x73625140] }
  0xbc   :  { %537 = vmatmul.bf16.gmra.mxu2 %v343_v56  ;;  %2741 = vmatmul.msk.bf16.gmra.mxu3 %vm459_vm9, %v344_v57  ;;  %v219_v48 = vpop.permute.xlu0 %218  ;;  %v223_v59 = vpop.permute.xlu1 %222 }
  0xbd   :  { %v240_v60 = vsel %vm91_vm2, %v238_v1, %v223_v59  ;;  %v239_v13 = vsel %vm88_vm3, %v237_v12, %v219_v48 }
  0xbe   :  { %v242_v61 = vsel %vm94_vm4, %v240_v60, %v231_v54 }
  0xbf   :  { %v248_v62 = vsel %vm101_vm5, %v242_v61, %v246_v58  ;;  %v249_v4 = vsel %vm103_vm6, %v242_v61, %v246_v58  ;;  %v251_v63 = vsel %vm106_vm7, %v242_v61, %v246_v58 }
  0xc0   :  { %v250_v3 = vrot.slane %v249_v4, 2  ;;  %v252_v8 = vrot.slane %v251_v63, 4  ;;  %317 = vst [vmem:[#allocation1 + $0x2] ss:$4 sm:$0xff] %v248_v62 }
  0xc2   :  { %319 = vst [vmem:[#allocation1 + $0x3] ss:$4 sm:$0xff] %v250_v3 }
  0xc3   :  { %321 = vst [vmem:[#allocation1 + $0x20] ss:$4 sm:$0xff] %v252_v8 }
  0xc4   :  { %v225_v14 = vpop.permute.xlu0 %224  ;;  %v233_v15 = vpop.permute.xlu1 %232 }
  0xc5   :  { %v241_v16 = vsel %vm91_vm2, %v239_v13, %v225_v14  ;;  %v247_v17 = vrot.slane %v233_v15, 6 }
  0xc6   :  { %v243_v18 = vsel %vm94_vm4, %v241_v16, %v233_v15 }
  0xc7   :  { %v253_v19 = vsel %vm101_vm5, %v243_v18, %v247_v17  ;;  %v254_v20 = vsel %vm103_vm6, %v243_v18, %v247_v17  ;;  %v256_v0 = vsel %vm106_vm7, %v243_v18, %v247_v17 }
  0xc8   :  { %v255_v21 = vrot.slane %v254_v20, 2  ;;  %v257_v23 = vrot.slane %v256_v0, 4  ;;  %323 = vst [vmem:[#allocation1 + $0x21] ss:$4 sm:$0xff] %v253_v19 }
  0xc9   :  { %v328_v9 = vld.sshfl [vmem:[#allocation1] sm:$0xff pattern:$0x73625140]  ;;  %v329_v24 = vld.sshfl [vmem:[#allocation1 + $0x8] sm:$0xff pattern:$0x73625140] }
  0xca   :  { %325 = vst [vmem:[#allocation1 + $0x22] ss:$4 sm:$0xff] %v255_v21  ;;  %v339_v27 = vsel %vm336_vm8, %v310_v10, %v328_v9  ;;  %v340_v28 = vsel %vm336_vm8, %v311_v11, %v329_v24 }
  0xcb   :  { %327 = vst [vmem:[#allocation1 + $0x23] ss:$4 sm:$0xff] %v257_v23 }
  0xd2   :  { %v330_v25 = vld.sshfl [vmem:[#allocation1 + $0x20] sm:$0xff pattern:$0x73625140]  ;;  %v331_v26 = vld.sshfl [vmem:[#allocation1 + $0x28] sm:$0xff pattern:$0x73625140] }
  0xd3   :  { %v345_v2 = vpack.c.bf16 %v330_v25, %v339_v27  ;;  %v346_v29 = vpack.c.bf16 %v331_v26, %v340_v28 }
  0xd5   :  { %494 = vmatmul.bf16.gmra.mxu0 %v345_v2  ;;  %2739 = vmatmul.msk.bf16.gmra.mxu1 %vm459_vm9, %v346_v29 }
  0xd6   :  { %542 = vmatmul.bf16.gmra.mxu2 %v345_v2  ;;  %2742 = vmatmul.msk.bf16.gmra.mxu3 %vm459_vm9, %v346_v29 }
 0x11b   :  { %v485_v30 = vpop.f32.mrf.mxu0  ;;  %v509_v32 = vpop.f32.mrf.mxu1 }
 0x11c   :  { %v486_v35 = vadd.f32 %v485_v30, %v4147_v38 }
 0x11e   :  { %v510_v55 = vadd.f32 %v509_v32, %v486_v35 }
 0x120   :  { %v572_v59 = vmax.f32 %v510_v55, 0.0 }
 0x122   :  { %v533_v31 = vpop.f32.mrf.mxu2  ;;  %v557_v33 = vpop.f32.mrf.mxu3 }
 0x123   :  { %v487_v34 = vpop.f32.mrf.mxu0  ;;  %v511_v5 = vpop.f32.mrf.mxu1  ;;  %v534_v44 = vadd.f32 %v533_v31, %v4145_v22 }
 0x124   :  { %v488_v42 = vadd.f32 %v487_v34, %v4147_v38 }
 0x125   :  { %v558_v51 = vadd.f32 %v557_v33, %v534_v44 }
 0x126   :  { %v512_v45 = vadd.f32 %v511_v5, %v488_v42 }
 0x127   :  { %v573_v1 = vmax.f32 %v558_v51, 0.0 }
 0x128   :  { %v574_v53 = vmax.f32 %v512_v45, 0.0 }
 0x129   :  { %v584_v62 = vmax.f32 %v572_v59, %v573_v1 }
 0x12a   :  { %v535_v37 = vpop.f32.mrf.mxu2  ;;  %v559_v40 = vpop.f32.mrf.mxu3 }
 0x12b   :  { %v536_v39 = vadd.f32 %v535_v37, %v4145_v22 }
 0x12d   :  { %v560_v6 = vadd.f32 %v559_v40, %v536_v39 }
 0x12f   :  { %v575_v7 = vmax.f32 %v560_v6, 0.0 }
 0x131   :  { %v585_v56 = vmax.f32 %v574_v53, %v575_v7 }
 0x133   :  { %v592_v60 = vrot.slane %v585_v56, 4 }
 0x138   :  { %v490_v41 = vpop.f32.mrf.mxu0  ;;  %v514_v46 = vpop.f32.mrf.mxu1 }
 0x139   :  { %v491_v43 = vadd.f32 %v490_v41, %v4147_v38 }
 0x13b   :  { %v515_v49 = vadd.f32 %v514_v46, %v491_v43 }
 0x13d   :  { %v576_v57 = vmax.f32 %v515_v49, 0.0 }
 0x13f   :  { %v538_v47 = vpop.f32.mrf.mxu2  ;;  %v562_v52 = vpop.f32.mrf.mxu3 }
 0x140   :  { %v539_v50 = vadd.f32 %v538_v47, %v4145_v22  ;;  %v492_v63 = vpop.f32.mrf.mxu0  ;;  %v516_v11 = vpop.f32.mrf.mxu1 }
 0x141   :  { %v493_v33 = vadd.f32 %v492_v63, %v4147_v38 }
 0x142   :  { %v563_v54 = vadd.f32 %v562_v52, %v539_v50 }
 0x143   :  { %v517_v43 = vadd.f32 %v516_v11, %v493_v33  ;;  %v3572_v33 = vld [vmem:[%s5567_s3 + $0x64] sm:$0xf0] }
 0x144   :  { %v577_v58 = vmax.f32 %v563_v54, 0.0 }
 0x145   :  { %v578_v7 = vmax.f32 %v517_v43, 0.0  ;;  %v3568_v43 = vld [vmem:[%s5567_s3 + $0x44] sm:$0xf0] }
 0x146   :  { %v586_v48 = vmax.f32 %v576_v57, %v577_v58 }
 0x147   :  { %v540_v15 = vpop.f32.mrf.mxu2  ;;  %v564_v16 = vpop.f32.mrf.mxu3 }
 0x148   :  { %v593_v61 = vrot.slane %v586_v48, 4  ;;  %v541_v31 = vadd.f32 %v540_v15, %v4145_v22 }
 0x14a   :  { %v594_v4 = vsel %vm336_vm8, %v592_v60, %v593_v61  ;;  %v598_v12 = vmax.f32 %v585_v56, %v593_v61  ;;  %v565_v40 = vadd.f32 %v564_v16, %v541_v31 }
 0x14b   :  { %v597_v3 = vmax.f32 %v584_v62, %v594_v4 }
 0x14c   :  { %v4172_v19 = vpack.c.bf16 %v598_v12, %v598_v12  ;;  %v579_v46 = vmax.f32 %v565_v40, 0.0  ;;  %v2849_v40 = vld [vmem:[%s5567_s3 + $0xd0] sm:$0xf] }
 0x14d   :  { %v4156_v8 = vpack.c.bf16 %v597_v3, %v597_v3 }
 0x14e   :  { %v613_v21 = vrot.slane %v4172_v19, 3 }
 0x14f   :  { %v4159_v10 = vrot.slane %v4156_v8, 3 }
 0x150   :  { %v4186_v28 = vsel %vm614_vm10, %v4172_v19, %v613_v21  ;;  %v633_v11 = vsel %vm618_vm11, %v4172_v19, %v613_v21 }
 0x151   :  { %v4164_v13 = vsel %vm614_vm10, %v4156_v8, %v4159_v10  ;;  %v619_v14 = vsel %vm618_vm11, %v4156_v8, %v4159_v10  ;;  %v627_v20 = vsel %vm626_vm12, %v4156_v8, %v4159_v10  ;;  %v623_v4 = vsel %vm622_vm13, %v4156_v8, %v4159_v10 }
 0x152   :  { %v4169_v17 = vrot.slane %v619_v14, 1  ;;  %660 = vst [vmem:[#allocation1] ss:$9 sm:$0xff] %v4164_v13  ;;  %v495_v18 = vpop.f32.mrf.mxu0  ;;  %v519_v0 = vpop.f32.mrf.mxu1  ;;  %v4179_v24 = vrot.slane %v627_v20, 3  ;;  %v4220_v3 = vrot.slane %v623_v4, 2  ;;  %v4229_v14 = vrot.slane %v633_v11, 1 }
 0x153   :  { %v496_v2 = vadd.f32 %v495_v18, %v4147_v38 }
 0x154   :  { %663 = vst [vmem:[#allocation1 + $0x1] ss:$9 sm:$0xff] %v4169_v17 }
 0x155   :  { %v520_v32 = vadd.f32 %v519_v0, %v496_v2 }
 0x157   :  { %v580_v42 = vmax.f32 %v520_v32, 0.0  ;;  %v2793_v32 = vld [vmem:[%s5567_s3 + $0x60] sm:$0xf] }
 0x159   :  { %v543_v23 = vpop.f32.mrf.mxu2  ;;  %v567_v9 = vpop.f32.mrf.mxu3 }
 0x15a   :  { %v544_v25 = vadd.f32 %v543_v23, %v4145_v22  ;;  %v497_v27 = vpop.f32.mrf.mxu0  ;;  %v521_v34 = vpop.f32.mrf.mxu1 }
 0x15b   :  { %v4182_v26 = vld [vmem:[#allocation1] sm:$0xff]  ;;  %v498_v30 = vadd.f32 %v497_v27, %v4147_v38  ;;  %v587_v38 = vmax.f32 %v578_v7, %v579_v46  ;;  %v2865_v27 = vld [vmem:[%s5567_s3 + $0xf0] sm:$0xf]  ;;  %v3584_v7 = vld [vmem:[%s5567_s3 + $0xc4] sm:$0xf0] }
 0x15c   :  { %666 = vst [vmem:[#allocation1] ss:$9 sm:$0xff] %v4179_v24  ;;  %v568_v29 = vadd.f32 %v567_v9, %v544_v25  ;;  %v2801_v9 = vld [vmem:[%s5567_s3 + $0x70] sm:$0xf]  ;;  %v3574_v25 = vld [vmem:[%s5567_s3 + $0x74] sm:$0xf0] }
 0x15d   :  { %667 = vst [vmem:[#allocation1 + $0x1] ss:$9 sm:$0xff] %v4186_v28  ;;  %v522_v5 = vadd.f32 %v521_v34, %v498_v30  ;;  %v2802_v2 = vor.u32 %v3574_v25, %v2801_v9  ;;  %v2794_v34 = vor.u32 %v3572_v33, %v2793_v32  ;;  %v2993_v46 = vld [vmem:[%s5567_s3 + $0x1f0] sm:$0xf]  ;;  %v3602_v25 = vld [vmem:[%s5567_s3 + $0x154] sm:$0xf0] }
 0x15e   :  { %v581_v37 = vmax.f32 %v568_v29, 0.0  ;;  %v3590_v29 = vld [vmem:[%s5567_s3 + $0xf4] sm:$0xf0]  ;;  %v2913_v9 = vld [vmem:[%s5567_s3 + $0x150] sm:$0xf] }
 0x15f   :  { %v582_v45 = vmax.f32 %v522_v5, 0.0  ;;  %v2866_v31 = vor.u32 %v3590_v29, %v2865_v27  ;;  %1359 = vmatpush.bf16.msrb.mxu1 %v2802_v2  ;;  %v2785_v5 = vld [vmem:[%s5567_s3 + $0x50] sm:$0xf]  ;;  %v2914_v27 = vor.u32 %v3602_v25, %v2913_v9  ;;  %v3618_v29 = vld [vmem:[%s5567_s3 + $0x1d4] sm:$0xf0] }
 0x160   :  { %v588_v44 = vmax.f32 %v580_v42, %v581_v37  ;;  %v2977_v2 = vld [vmem:[%s5567_s3 + $0x1d0] sm:$0xf]  ;;  %v2761_v32 = vld [vmem:[%s5567_s3 + $0x20] sm:$0xf]  ;;  %v3564_v33 = vld [vmem:[%s5567_s3 + $0x24] sm:$0xf0] }
 0x161   :  { %v545_v36 = vpop.f32.mrf.mxu2  ;;  %v569_v41 = vpop.f32.mrf.mxu3  ;;  %1373 = vmatpush.bf16.msrb.mxu3 %v2866_v31  ;;  %v2803_v9 = vld [vmem:[%s5567_s3 + $0x78] sm:$0xf0]  ;;  %v2953_v25 = vld [vmem:[%s5567_s3 + $0x1a0] sm:$0xf] }
 0x162   :  { %v546_v39 = vadd.f32 %v545_v36, %v4145_v22  ;;  %v601_v49 = vrot.slane %v588_v44, 4  ;;  %v2857_v36 = vld [vmem:[%s5567_s3 + $0xe0] sm:$0xf] }
 0x163   :  { %1360 = vmatpush.bf16.msrb.mxu1 %v2794_v34  ;;  %v2825_v34 = vld [vmem:[%s5567_s3 + $0xa0] sm:$0xf] }
 0x164   :  { %v570_v6 = vadd.f32 %v569_v41, %v546_v39  ;;  %v4196_v55 = vld [vmem:[#allocation1] sm:$0xff]  ;;  %v3570_v39 = vld [vmem:[%s5567_s3 + $0x54] sm:$0xf0] }
 0x165   :  { %v3586_v41 = vld [vmem:[%s5567_s3 + $0xd4] sm:$0xf0]  ;;  %v2786_v42 = vor.u32 %v3570_v39, %v2785_v5  ;;  %v3600_v5 = vld [vmem:[%s5567_s3 + $0x144] sm:$0xf0]  ;;  %v2969_v39 = vld [vmem:[%s5567_s3 + $0x1c0] sm:$0xf] }
 0x166   :  { %v583_v35 = vmax.f32 %v570_v6, 0.0  ;;  %v2777_v6 = vld [vmem:[%s5567_s3 + $0x40] sm:$0xf] }
 0x167   :  { %1361 = vmatpush.bf16.msrb.mxu1 %v2786_v42  ;;  %v2753_v42 = vld [vmem:[%s5567_s3 + $0x10] sm:$0xf] }
 0x168   :  { %v589_v47 = vmax.f32 %v582_v45, %v583_v35  ;;  %v2929_v45 = vld [vmem:[%s5567_s3 + $0x170] sm:$0xf]  ;;  %v3606_v35 = vld [vmem:[%s5567_s3 + $0x174] sm:$0xf0] }
 0x16a   :  { %v602_v50 = vrot.slane %v589_v47, 4  ;;  %v2841_v47 = vld [vmem:[%s5567_s3 + $0xc0] sm:$0xf] }
 0x16c   :  { %v603_v51 = vsel %vm336_vm8, %v601_v49, %v602_v50  ;;  %v607_v22 = vmax.f32 %v588_v44, %v602_v50  ;;  %v2850_v44 = vor.u32 %v3586_v41, %v2849_v40  ;;  %v2930_v49 = vor.u32 %v3606_v35, %v2929_v45  ;;  %v3622_v50 = vld [vmem:[%s5567_s3 + $0x1f4] sm:$0xf0]  ;;  %v3616_v40 = vld [vmem:[%s5567_s3 + $0x1c4] sm:$0xf0]  ;;  %v2817_v45 = vld [vmem:[%s5567_s3 + $0x90] sm:$0xf] }
 0x16d   :  { %v606_v52 = vmax.f32 %v587_v38, %v603_v51  ;;  %v2994_v38 = vor.u32 %v3622_v50, %v2993_v46  ;;  %v2921_v51 = vld [vmem:[%s5567_s3 + $0x160] sm:$0xf]  ;;  %v2762_v41 = vor.u32 %v3564_v33, %v2761_v32  ;;  %v2970_v35 = vor.u32 %v3616_v40, %v2969_v39  ;;  %v2897_v46 = vld [vmem:[%s5567_s3 + $0x130] sm:$0xf]  ;;  %v3614_v50 = vld [vmem:[%s5567_s3 + $0x1b4] sm:$0xf0] }
 0x16e   :  { %v637_v1 = vpack.c.bf16 %v607_v22, %v607_v22  ;;  %1387 = vmatpush.bf16.msrb.mxu0 %v2930_v49  ;;  %v3620_v22 = vld [vmem:[%s5567_s3 + $0x1e4] sm:$0xf0]  ;;  %v2961_v49 = vld [vmem:[%s5567_s3 + $0x1b0] sm:$0xf]  ;;  %v3594_v33 = vld [vmem:[%s5567_s3 + $0x114] sm:$0xf0] }
 0x16f   :  { %v636_v53 = vpack.c.bf16 %v606_v52, %v606_v52  ;;  %v2778_v52 = vor.u32 %v3568_v43, %v2777_v6  ;;  %1401 = vmatpush.bf16.msrb.mxu2 %v2994_v38  ;;  %v3562_v6 = vld [vmem:[%s5567_s3 + $0x14] sm:$0xf0]  ;;  %v2881_v32 = vld [vmem:[%s5567_s3 + $0x110] sm:$0xf]  ;;  %v2795_v39 = vld [vmem:[%s5567_s3 + $0x68] sm:$0xf0] }
 0x170   :  { %v641_v59 = vrot.slane %v637_v1, 3  ;;  %v2945_v40 = vld [vmem:[%s5567_s3 + $0x190] sm:$0xf] }
 0x171   :  { %v640_v54 = vrot.slane %v636_v53, 3  ;;  %1362 = vmatpush.bf16.msrb.mxu1 %v2778_v52  ;;  %v3560_v52 = vld [vmem:[%s5567_s3 + $0x4] sm:$0xf0] }
 0x172   :  { %v4212_v62 = vsel %vm614_vm10, %v637_v1, %v641_v59  ;;  %v657_v16 = vsel %vm618_vm11, %v637_v1, %v641_v59  ;;  %v2842_v1 = vor.u32 %v3584_v7, %v2841_v47  ;;  %v3566_v59 = vld [vmem:[%s5567_s3 + $0x34] sm:$0xf0] }
 0x173   :  { %v4199_v56 = vsel %vm614_vm10, %v636_v53, %v640_v54  ;;  %v645_v57 = vsel %vm618_vm11, %v636_v53, %v640_v54  ;;  %v651_v48 = vsel %vm626_vm12, %v636_v53, %v640_v54  ;;  %v648_v8 = vsel %vm622_vm13, %v636_v53, %v640_v54  ;;  %v3604_v53 = vld [vmem:[%s5567_s3 + $0x164] sm:$0xf0]  ;;  %v2985_v54 = vld [vmem:[%s5567_s3 + $0x1e0] sm:$0xf]  ;;  %v3598_v47 = vld [vmem:[%s5567_s3 + $0x134] sm:$0xf0] }
 0x174   :  { %v4202_v58 = vrot.slane %v645_v57, 1  ;;  %669 = vst [vmem:[#allocation1] ss:$9 sm:$0xff] %v4199_v56  ;;  %v4207_v60 = vrot.slane %v651_v48, 3  ;;  %v4236_v15 = vrot.slane %v648_v8, 2  ;;  %v4244_v19 = vrot.slane %v657_v16, 1 }
 0x175   :  { %v2769_v48 = vld [vmem:[%s5567_s3 + $0x30] sm:$0xf]  ;;  %v2922_v4 = vor.u32 %v3604_v53, %v2921_v51  ;;  %v2986_v11 = vor.u32 %v3620_v22, %v2985_v54  ;;  %v3582_v16 = vld [vmem:[%s5567_s3 + $0xb4] sm:$0xf0]  ;;  %v2745_v51 = vld [vmem:[%s5567_s3] sm:$0xf]  ;;  %v2754_v53 = vor.u32 %v3562_v6, %v2753_v42  ;;  %v2882_v42 = vor.u32 %v3594_v33, %v2881_v32 }
 0x176   :  { %672 = vst [vmem:[#allocation1 + $0x1] ss:$9 sm:$0xff] %v4202_v58  ;;  %v2833_v8 = vld [vmem:[%s5567_s3 + $0xb0] sm:$0xf]  ;;  %v3578_v7 = vld [vmem:[%s5567_s3 + $0x94] sm:$0xf0] }
 0x177   :  { %1388 = vmatpush.bf16.msrb.mxu0 %v2922_v4  ;;  %v2834_v31 = vor.u32 %v3582_v16, %v2833_v8  ;;  %1402 = vmatpush.bf16.msrb.mxu2 %v2986_v11  ;;  %v2809_v54 = vld [vmem:[%s5567_s3 + $0x80] sm:$0xf]  ;;  %v3576_v22 = vld [vmem:[%s5567_s3 + $0x84] sm:$0xf0]  ;;  %v3638_v8 = vld [vmem:[%s5567_s3 + $0x274] sm:$0xf0] }
 0x178   :  { %v2889_v4 = vld [vmem:[%s5567_s3 + $0x120] sm:$0xf]  ;;  %v3596_v11 = vld [vmem:[%s5567_s3 + $0x124] sm:$0xf0]  ;;  %v3573_v16 = vld [vmem:[%s5567_s3 + $0x74] sm:$0xf] }
 0x179   :  { %v3041_v6 = vld [vmem:[%s5567_s3 + $0x250] sm:$0xf] }
 0x17a   :  { %v3025_v32 = vld [vmem:[%s5567_s3 + $0x230] sm:$0xf] }
 0x17b   :  { %1389 = vmatpush.bf16.msrb.mxu0 %v2914_v27  ;;  %v2746_v27 = vor.u32 %v3560_v52, %v2745_v51  ;;  %v3589_v51 = vld [vmem:[%s5567_s3 + $0xf4] sm:$0xf]  ;;  %v2867_v52 = vld [vmem:[%s5567_s3 + $0xf8] sm:$0xf0] }
 0x17d   :  { %v4209_v61 = vld [vmem:[#allocation1] sm:$0xff] }
 0x17e   :  { %676 = vst [vmem:[#allocation1] ss:$9 sm:$0xff] %v4207_v60 }
 0x17f   :  { %677 = vst [vmem:[#allocation1 + $0x1] ss:$9 sm:$0xff] %v4212_v62 }
 0x186   :  { %v4218_v63 = vld [vmem:[#allocation1] sm:$0xff] }
 0x187   :  { %680 = vst [vmem:[#allocation1] ss:$9 sm:$0xff] %v4164_v13 }
 0x188   :  { %682 = vst [vmem:[#allocation1 + $0x1] ss:$9 sm:$0xff] %v4169_v17 }
 0x189   :  { %685 = vst [vmem:[#allocation1 + $0x2] ss:$9 sm:$0xff] %v4220_v3 }
 0x190   :  { %v4227_v12 = vld [vmem:[#allocation1] sm:$0xff] }
 0x191   :  { %687 = vst [vmem:[#allocation1] ss:$9 sm:$0xff] %v4179_v24 }
 0x192   :  { %688 = vst [vmem:[#allocation1 + $0x1] ss:$9 sm:$0xff] %v4186_v28 }
 0x193   :  { %690 = vst [vmem:[#allocation1 + $0x2] ss:$9 sm:$0xff] %v4229_v14 }
 0x19a   :  { %v4234_v10 = vld [vmem:[#allocation1] sm:$0xff] }
 0x19b   :  { %704 = vst [vmem:[#allocation1] ss:$9 sm:$0xff] %v4199_v56 }
 0x19c   :  { %706 = vst [vmem:[#allocation1 + $0x1] ss:$9 sm:$0xff] %v4202_v58 }
 0x19d   :  { %709 = vst [vmem:[#allocation1 + $0x2] ss:$9 sm:$0xff] %v4236_v15 }
 0x1a4   :  { %v4242_v18 = vld [vmem:[#allocation1] sm:$0xff] }
 0x1a5   :  { %711 = vst [vmem:[#allocation1] ss:$9 sm:$0xff] %v4207_v60 }
 0x1a6   :  { %712 = vst [vmem:[#allocation1 + $0x1] ss:$9 sm:$0xff] %v4212_v62 }
 0x1a7   :  { %714 = vst [vmem:[#allocation1 + $0x2] ss:$9 sm:$0xff] %v4244_v19 }
 0x1ae   :  { %v4249_v20 = vld [vmem:[#allocation1] sm:$0xff] }
 0x1af   :  { %728 = vst [vmem:[#allocation1] ss:$9 sm:$0xff] %v4169_v17 }
 0x1b0   :  { %730 = vst [vmem:[#allocation1 + $0x1] ss:$9 sm:$0xff] %v4220_v3 }
 0x1b7   :  { %v4253_v0 = vld [vmem:[#allocation1] sm:$0xff] }
 0x1b8   :  { %732 = vst [vmem:[#allocation1] ss:$9 sm:$0xff] %v4186_v28 }
 0x1b9   :  { %733 = vst [vmem:[#allocation1 + $0x1] ss:$9 sm:$0xff] %v4229_v14 }
 0x1c0   :  { %v4257_v21 = vld [vmem:[#allocation1] sm:$0xff] }
 0x1c1   :  { %753 = vst [vmem:[#allocation1] ss:$9 sm:$0xff] %v4199_v56 }
 0x1c2   :  { %755 = vst [vmem:[#allocation1 + $0x1] ss:$9 sm:$0xff] %v4202_v58 }
 0x1c9   :  { %v4261_v23 = vld [vmem:[#allocation1] sm:$0xff] }
 0x1ca   :  { %757 = vst [vmem:[#allocation1] ss:$9 sm:$0xff] %v4207_v60 }
 0x1cb   :  { %758 = vst [vmem:[#allocation1 + $0x1] ss:$9 sm:$0xff] %v4212_v62 }
 0x1d2   :  { %v4277_v30 = vld [vmem:[#allocation1] sm:$0xff] }
 0x1d3   :  { %760 = vst [vmem:[#allocation1] ss:$9 sm:$0xff] %v4164_v13  ;;  %v3588_v13 = vld [vmem:[%s5567_s3 + $0xe4] sm:$0xf0] }
 0x1d4   :  { %762 = vst [vmem:[#allocation1 + $0x1] ss:$9 sm:$0xff] %v4169_v17  ;;  %v2858_v37 = vor.u32 %v3588_v13, %v2857_v36  ;;  %v2978_v36 = vor.u32 %v3618_v29, %v2977_v2  ;;  %v3580_v13 = vld [vmem:[%s5567_s3 + $0xa4] sm:$0xf0]  ;;  %v2890_v2 = vor.u32 %v3596_v11, %v2889_v4  ;;  %v2810_v29 = vor.u32 %v3576_v22, %v2809_v54 }
 0x1d5   :  { %764 = vst [vmem:[#allocation1 + $0x2] ss:$9 sm:$0xff] %v4220_v3  ;;  %v3608_v54 = vld [vmem:[%s5567_s3 + $0x184] sm:$0xf0] }
 0x1d6   :  { %1374 = vmatpush.bf16.msrb.mxu3 %v2858_v37  ;;  %v2905_v37 = vld [vmem:[%s5567_s3 + $0x140] sm:$0xf]  ;;  %1403 = vmatpush.bf16.msrb.mxu2 %v2978_v36 }
 0x1d7   :  { %v2906_v43 = vor.u32 %v3600_v5, %v2905_v37  ;;  %v3636_v37 = vld [vmem:[%s5567_s3 + $0x264] sm:$0xf0]  ;;  %v3571_v5 = vld [vmem:[%s5567_s3 + $0x64] sm:$0xf] }
 0x1d9   :  { %1390 = vmatpush.bf16.msrb.mxu0 %v2906_v43  ;;  %v3634_v43 = vld [vmem:[%s5567_s3 + $0x254] sm:$0xf0] }
 0x1da   :  { %1375 = vmatpush.bf16.msrb.mxu3 %v2850_v44  ;;  %v2826_v44 = vor.u32 %v3580_v13, %v2825_v34  ;;  %1404 = vmatpush.bf16.msrb.mxu2 %v2970_v35  ;;  %v2806_v34 = vor.u32 %v3573_v16, %v2803_v9  ;;  %v3049_v13 = vld [vmem:[%s5567_s3 + $0x260] sm:$0xf]  ;;  %v3569_v35 = vld [vmem:[%s5567_s3 + $0x54] sm:$0xf]  ;;  %v3587_v16 = vld [vmem:[%s5567_s3 + $0xe4] sm:$0xf] }
 0x1db   :  { %v2859_v9 = vld [vmem:[%s5567_s3 + $0xe8] sm:$0xf0] }
 0x1dc   :  { %v4342_v57 = vld [vmem:[#allocation1] sm:$0xff]  ;;  %v2862_v33 = vor.u32 %v3587_v16, %v2859_v9  ;;  %v694_v16 = vshll.u32 %v4227_v12, 16  ;;  %v718_v9 = vshll.u32 %v4242_v18, 16 }
 0x1dd   :  { %766 = vst [vmem:[#allocation1] ss:$9 sm:$0xff] %v4179_v24  ;;  %v2770_v24 = vor.u32 %v3566_v59, %v2769_v48  ;;  %v3057_v48 = vld [vmem:[%s5567_s3 + $0x270] sm:$0xf]  ;;  %v2962_v59 = vor.u32 %v3614_v50, %v2961_v49  ;;  %v2798_v49 = vor.u32 %v3571_v5, %v2795_v39  ;;  %v3565_v5 = vld [vmem:[%s5567_s3 + $0x34] sm:$0xf] }
 0x1de   :  { %767 = vst [vmem:[#allocation1 + $0x1] ss:$9 sm:$0xff] %v4186_v28  ;;  %1376 = vmatpush.bf16.msrb.mxu3 %v2842_v1  ;;  %v2898_v1 = vor.u32 %v3598_v47, %v2897_v46  ;;  %v2787_v46 = vld [vmem:[%s5567_s3 + $0x58] sm:$0xf0]  ;;  %v2873_v47 = vld [vmem:[%s5567_s3 + $0x100] sm:$0xf] }
 0x1df   :  { %768 = vst [vmem:[#allocation1 + $0x2] ss:$9 sm:$0xff] %v4229_v14  ;;  %1363 = vmatpush.bf16.msrb.mxu1 %v2770_v24  ;;  %v3612_v24 = vld [vmem:[%s5567_s3 + $0x1a4] sm:$0xf0]  ;;  %1405 = vmatpush.bf16.msrb.mxu2 %v2962_v59  ;;  %v2870_v59 = vor.u32 %v3589_v51, %v2867_v52  ;;  %v2790_v4 = vor.u32 %v3569_v35, %v2787_v46  ;;  %v2771_v39 = vld [vmem:[%s5567_s3 + $0x38] sm:$0xf0] }
 0x1e0   :  { %1391 = vmatpush.bf16.msrb.mxu0 %v2898_v1  ;;  %v2954_v36 = vor.u32 %v3612_v24, %v2953_v25  ;;  %v3605_v1 = vld [vmem:[%s5567_s3 + $0x174] sm:$0xf]  ;;  %v3567_v25 = vld [vmem:[%s5567_s3 + $0x44] sm:$0xf]  ;;  %v2779_v24 = vld [vmem:[%s5567_s3 + $0x48] sm:$0xf0] }
 0x1e1   :  { %v3628_v35 = vld [vmem:[%s5567_s3 + $0x224] sm:$0xf0]  ;;  %v3599_v52 = vld [vmem:[%s5567_s3 + $0x144] sm:$0xf] }
 0x1e2   :  { %1377 = vmatpush.bf16.msrb.mxu3 %v2834_v31  ;;  %v3058_v31 = vor.u32 %v3638_v8, %v3057_v48  ;;  %v3042_v48 = vor.u32 %v3634_v43, %v3041_v6  ;;  %v3632_v8 = vld [vmem:[%s5567_s3 + $0x244] sm:$0xf0] }
 0x1e3   :  { %1364 = vmatpush.bf16.msrb.mxu1 %v2762_v41  ;;  %v3610_v41 = vld [vmem:[%s5567_s3 + $0x194] sm:$0xf0]  ;;  %1406 = vmatpush.bf16.msrb.mxu2 %v2954_v36 }
 0x1e4   :  { %1392 = vmatpush.bf16.msrb.mxu0 %v2890_v2  ;;  %v2946_v50 = vor.u32 %v3610_v41, %v2945_v40  ;;  %v3603_v2 = vld [vmem:[%s5567_s3 + $0x164] sm:$0xf]  ;;  %v3630_v36 = vld [vmem:[%s5567_s3 + $0x234] sm:$0xf0]  ;;  %v3601_v41 = vld [vmem:[%s5567_s3 + $0x154] sm:$0xf] }
 0x1e5   :  { %v3026_v43 = vor.u32 %v3630_v36, %v3025_v32  ;;  %v722_v36 = vshrl.u32 %v4249_v20, 16 }
 0x1e6   :  { %v4419_v38 = vld [vmem:[#allocation1] sm:$0xff]  ;;  %1378 = vmatpush.bf16.msrb.mxu3 %v2826_v44 }
 0x1e7   :  { %782 = vst [vmem:[#allocation1] ss:$9 sm:$0xff] %v4199_v56  ;;  %v2818_v56 = vor.u32 %v3578_v7, %v2817_v45  ;;  %1365 = vmatpush.bf16.msrb.mxu1 %v2754_v53  ;;  %v3050_v45 = vor.u32 %v3636_v37, %v3049_v13  ;;  %v3592_v7 = vld [vmem:[%s5567_s3 + $0x104] sm:$0xf0]  ;;  %v2937_v53 = vld [vmem:[%s5567_s3 + $0x180] sm:$0xf]  ;;  %1407 = vmatpush.bf16.msrb.mxu2 %v2946_v50 }
 0x1e8   :  { %784 = vst [vmem:[#allocation1 + $0x1] ss:$9 sm:$0xff] %v4202_v58  ;;  %1393 = vmatpush.bf16.msrb.mxu0 %v2882_v42  ;;  %v2874_v22 = vor.u32 %v3592_v7, %v2873_v47  ;;  %v2938_v11 = vor.u32 %v3608_v54, %v2937_v53  ;;  %v3585_v13 = vld [vmem:[%s5567_s3 + $0xd4] sm:$0xf]  ;;  %v2851_v37 = vld [vmem:[%s5567_s3 + $0xd8] sm:$0xf0]  ;;  %v2774_v47 = vor.u32 %v3565_v5, %v2771_v39 }
 0x1e9   :  { %786 = vst [vmem:[#allocation1 + $0x2] ss:$9 sm:$0xff] %v4236_v15  ;;  %v2915_v42 = vld [vmem:[%s5567_s3 + $0x158] sm:$0xf0]  ;;  %v2854_v46 = vor.u32 %v3585_v13, %v2851_v37  ;;  %v3583_v7 = vld [vmem:[%s5567_s3 + $0xc4] sm:$0xf] }
 0x1ea   :  { %1379 = vmatpush.bf16.msrb.mxu3 %v2818_v56  ;;  %v3033_v56 = vld [vmem:[%s5567_s3 + $0x240] sm:$0xf]  ;;  %v3563_v50 = vld [vmem:[%s5567_s3 + $0x24] sm:$0xf]  ;;  %v2918_v51 = vor.u32 %v3601_v41, %v2915_v42  ;;  %v2907_v53 = vld [vmem:[%s5567_s3 + $0x148] sm:$0xf0] }
 0x1eb   :  { %1366 = vmatpush.bf16.msrb.mxu1 %v2746_v27  ;;  %1408 = vmatpush.bf16.msrb.mxu2 %v2938_v11  ;;  %v698_v13 = vshrl.u32 %v4234_v10, 16  ;;  %v735_v37 = vrot.slane %v4209_v61, 6  ;;  %v2747_v61 = vld [vmem:[%s5567_s3 + $0x8] sm:$0xf0]  ;;  %v3581_v41 = vld [vmem:[%s5567_s3 + $0xb4] sm:$0xf] }
 0x1ec   :  { %1394 = vmatpush.bf16.msrb.mxu0 %v2874_v22 }
 0x1ee   :  { %1380 = vmatpush.bf16.msrb.mxu3 %v2810_v29  ;;  %v2923_v29 = vld [vmem:[%s5567_s3 + $0x168] sm:$0xf0] }
 0x1ef   :  { %1415 = vmatpush.bf16.msra.mxu1 %v3058_v31  ;;  %v3034_v31 = vor.u32 %v3632_v8, %v3033_v56  ;;  %v2926_v40 = vor.u32 %v3603_v2, %v2923_v29  ;;  %v2755_v56 = vld [vmem:[%s5567_s3 + $0x18] sm:$0xf0]  ;;  %v692_v2 = vshrl.u32 %v4227_v12, 16  ;;  %v700_v29 = vshll.u32 %v4234_v10, 16 }
 0x1f0   :  { %v4490_v44 = vld [vmem:[#allocation1] sm:$0xff]  ;;  %1443 = vmatpush.bf16.msra.mxu0 %v2870_v59  ;;  %v2910_v59 = vor.u32 %v3599_v52, %v2907_v53 }
 0x1f1   :  { %789 = vst [vmem:[#allocation1 + $0x1] ss:$9 sm:$0xff] %v4212_v62 }
 0x1f2   :  { %1429 = vmatpush.bf16.msra.mxu3 %v2806_v34  ;;  %788 = vst [vmem:[#allocation1] ss:$9 sm:$0xff] %v4207_v60  ;;  %v2931_v60 = vld [vmem:[%s5567_s3 + $0x178] sm:$0xf0]  ;;  %v2782_v34 = vor.u32 %v3567_v25, %v2779_v24  ;;  %v696_v25 = vrot.slane %v694_v16, 1  ;;  %v724_v24 = vshll.u32 %v4249_v20, 16 }
 0x1f3   :  { %790 = vst [vmem:[#allocation1 + $0x2] ss:$9 sm:$0xff] %v4244_v19  ;;  %1416 = vmatpush.bf16.msra.mxu1 %v3050_v45  ;;  %v2934_v27 = vor.u32 %v3605_v1, %v2931_v60  ;;  %v3017_v45 = vld [vmem:[%s5567_s3 + $0x220] sm:$0xf]  ;;  %v3009_v1 = vld [vmem:[%s5567_s3 + $0x210] sm:$0xf] }
 0x1f4   :  { %1444 = vmatpush.bf16.msra.mxu0 %v2862_v33  ;;  %v3626_v60 = vld [vmem:[%s5567_s3 + $0x214] sm:$0xf0]  ;;  %v726_v32 = vrot.slane %v724_v24, 1  ;;  %v702_v33 = vrot.slane %v700_v29, 1  ;;  %v3593_v24 = vld [vmem:[%s5567_s3 + $0x114] sm:$0xf] }
 0x1f5   :  { %1457 = vmatpush.bf16.msra.mxu2 %v2934_v27 }
 0x1f6   :  { %1430 = vmatpush.bf16.msra.mxu3 %v2798_v49  ;;  %v2843_v49 = vld [vmem:[%s5567_s3 + $0xc8] sm:$0xf0]  ;;  %v727_v5 = vor.u32 %v726_v32, %v722_v36  ;;  %v703_v39 = vor.u32 %v702_v33, %v698_v13  ;;  %v3575_v33 = vld [vmem:[%s5567_s3 + $0x84] sm:$0xf] }
 0x1f7   :  { %1417 = vmatpush.bf16.msra.mxu1 %v3042_v48  ;;  %v2846_v54 = vor.u32 %v3583_v7, %v2843_v49  ;;  %v3561_v48 = vld [vmem:[%s5567_s3 + $0x14] sm:$0xf]  ;;  %v778_v49 = vshll.u32 %v4419_v38, 16 }
 0x1f8   :  { %1445 = vmatpush.bf16.msra.mxu0 %v2854_v46  ;;  %v2758_v8 = vor.u32 %v3561_v48, %v2755_v56  ;;  %v794_v46 = vshll.u32 %v4490_v44, 16  ;;  %v740_v7 = vrot.slane %v727_v5, 2  ;;  %v739_v52 = vrot.slane %v703_v39, 4 }
 0x1f9   :  { %1458 = vmatpush.bf16.msra.mxu2 %v2926_v40  ;;  %v780_v56 = vrot.slane %v778_v49, 1  ;;  %v2987_v49 = vld [vmem:[%s5567_s3 + $0x1e8] sm:$0xf0] }
 0x1fa   :  { %1431 = vmatpush.bf16.msra.mxu3 %v2790_v4  ;;  %v4573_v6 = vld [vmem:[#allocation1] sm:$0xff]  ;;  %v3010_v4 = vor.u32 %v3626_v60, %v3009_v1  ;;  %v742_v60 = vsel %vm101_vm5, %v4182_v26, %v735_v37  ;;  %v751_v48 = vsel %vm106_vm7, %v739_v52, %v740_v7 }
 0x1fb   :  { %1418 = vmatpush.bf16.msra.mxu1 %v3034_v31  ;;  %804 = vst [vmem:[#allocation1] ss:$9 sm:$0xff] %v4169_v17  ;;  %v2763_v17 = vld [vmem:[%s5567_s3 + $0x28] sm:$0xf0]  ;;  %v720_v31 = vrot.slane %v718_v9, 1  ;;  %v770_v9 = vshrl.u32 %v4342_v57, 16 }
 0x1fc   :  { %806 = vst [vmem:[#allocation1 + $0x1] ss:$9 sm:$0xff] %v4220_v3  ;;  %v3018_v3 = vor.u32 %v3628_v35, %v3017_v45  ;;  %v2766_v22 = vor.u32 %v3563_v50, %v2763_v17  ;;  %1446 = vmatpush.bf16.msra.mxu0 %v2846_v54  ;;  %v3597_v45 = vld [vmem:[%s5567_s3 + $0x134] sm:$0xf]  ;;  %v772_v35 = vshll.u32 %v4342_v57, 16  ;;  %v800_v50 = vshll.u32 %v4573_v6, 16 }
 0x1fd   :  { %1459 = vmatpush.bf16.msra.mxu2 %v2918_v51  ;;  %v738_v51 = vrot.slane %v4218_v63, 6  ;;  %v2891_v63 = vld [vmem:[%s5567_s3 + $0x128] sm:$0xf0]  ;;  %v796_v54 = vrot.slane %v794_v46, 1  ;;  %v3619_v7 = vld [vmem:[%s5567_s3 + $0x1e4] sm:$0xf] }
 0x1fe   :  { %1432 = vmatpush.bf16.msra.mxu3 %v2782_v34 }
 0x1ff   :  { %1419 = vmatpush.bf16.msra.mxu1 %v3026_v43  ;;  %v2835_v43 = vld [vmem:[%s5567_s3 + $0xb8] sm:$0xf0]  ;;  %v748_v16 = vsel %vm101_vm5, %v4196_v55, %v738_v51  ;;  %v798_v55 = vshrl.u32 %v4573_v6, 16  ;;  %v3591_v6 = vld [vmem:[%s5567_s3 + $0x104] sm:$0xf] }
 0x201   :  { %1460 = vmatpush.bf16.msra.mxu2 %v2910_v59  ;;  %v802_v59 = vrot.slane %v800_v50, 1  ;;  %v3635_v50 = vld [vmem:[%s5567_s3 + $0x264] sm:$0xf] }
 0x202   :  { %1433 = vmatpush.bf16.msra.mxu3 %v2774_v47  ;;  %v2838_v47 = vor.u32 %v3581_v41, %v2835_v43 }
 0x203   :  { %1420 = vmatpush.bf16.msra.mxu1 %v3018_v3  ;;  %v4613_v11 = vld [vmem:[#allocation1] sm:$0xff]  ;;  %v2827_v3 = vld [vmem:[%s5567_s3 + $0xa8] sm:$0xf0]  ;;  %v803_v36 = vor.u32 %v802_v59, %v798_v55  ;;  %v3633_v59 = vld [vmem:[%s5567_s3 + $0x254] sm:$0xf] }
 0x204   :  { %809 = vst [vmem:[#allocation1] ss:$9 sm:$0xff] %v4186_v28  ;;  %v716_v28 = vshrl.u32 %v4242_v18, 16  ;;  %v3559_v18 = vld [vmem:[%s5567_s3 + $0x4] sm:$0xf]  ;;  %1447 = vmatpush.bf16.msra.mxu0 %v2838_v47  ;;  %v822_v13 = vrot.slane %v4613_v11, 2 }
 0x205   :  { %810 = vst [vmem:[#allocation1 + $0x1] ss:$9 sm:$0xff] %v4229_v14  ;;  %v697_v14 = vor.u32 %v696_v25, %v692_v2  ;;  %v2750_v42 = vor.u32 %v3559_v18, %v2747_v61  ;;  %v792_v25 = vshrl.u32 %v4490_v44, 16  ;;  %v2883_v2 = vld [vmem:[%s5567_s3 + $0x118] sm:$0xf0]  ;;  %v752_v44 = vsel %vm336_vm8, %v748_v16, %v751_v48 }
 0x206   :  { %1434 = vmatpush.bf16.msra.mxu3 %v2766_v22  ;;  %v721_v34 = vor.u32 %v720_v31, %v716_v28  ;;  %v776_v31 = vshrl.u32 %v4419_v38, 16  ;;  %v2886_v57 = vor.u32 %v3593_v24, %v2883_v2  ;;  %v2811_v38 = vld [vmem:[%s5567_s3 + $0x88] sm:$0xf0]  ;;  %v3621_v47 = vld [vmem:[%s5567_s3 + $0x1f4] sm:$0xf] }
 0x207   :  { %1421 = vmatpush.bf16.msra.mxu1 %v3010_v4  ;;  %v736_v12 = vrot.slane %v697_v14, 4  ;;  %v3577_v4 = vld [vmem:[%s5567_s3 + $0x94] sm:$0xf]  ;;  %v797_v32 = vor.u32 %v796_v54, %v792_v25  ;;  %v2814_v37 = vor.u32 %v3575_v33, %v2811_v38  ;;  %v2971_v25 = vld [vmem:[%s5567_s3 + $0x1c8] sm:$0xf0] }
 0x208   :  { %v737_v20 = vrot.slane %v721_v34, 2  ;;  %v781_v34 = vor.u32 %v780_v56, %v776_v31  ;;  %v3617_v48 = vld [vmem:[%s5567_s3 + $0x1d4] sm:$0xf]  ;;  %v2979_v56 = vld [vmem:[%s5567_s3 + $0x1d8] sm:$0xf0] }
 0x209   :  { %v821_v18 = vrot.slane %v797_v32, 4  ;;  %v3035_v24 = vld [vmem:[%s5567_s3 + $0x248] sm:$0xf0]  ;;  %v3613_v31 = vld [vmem:[%s5567_s3 + $0x1b4] sm:$0xf] }
 0x20a   :  { %1435 = vmatpush.bf16.msra.mxu3 %v2758_v8  ;;  %v745_v53 = vsel %vm106_vm7, %v736_v12, %v737_v20  ;;  %v2819_v8 = vld [vmem:[%s5567_s3 + $0x98] sm:$0xf0]  ;;  %v2875_v12 = vld [vmem:[%s5567_s3 + $0x108] sm:$0xf0]  ;;  %v823_v20 = vrot.slane %v781_v34, 6 }
 0x20b   :  { %v2822_v26 = vor.u32 %v3577_v4, %v2819_v8  ;;  %v746_v29 = vsel %vm336_vm8, %v742_v60, %v745_v53  ;;  %v830_v11 = vsel %vm106_vm7, %v821_v18, %v822_v13  ;;  %v3043_v4 = vld [vmem:[%s5567_s3 + $0x258] sm:$0xf0]  ;;  %v2982_v8 = vor.u32 %v3617_v48, %v2979_v56  ;;  %v3611_v33 = vld [vmem:[%s5567_s3 + $0x1a4] sm:$0xf]  ;;  %v3709_v48 = vld [vmem:[%s5569_s5 + $0x230] sm:$0xf0] }
 0x20c   :  { %v4620_v27 = vld [vmem:[#allocation1] sm:$0xff]  ;;  %v3046_v16 = vor.u32 %v3633_v59, %v3043_v4  ;;  %v2963_v55 = vld [vmem:[%s5567_s3 + $0x1b8] sm:$0xf0] }
 0x20d   :  { %813 = vst [vmem:[#allocation1] ss:$9 sm:$0xff] %v4202_v58  ;;  %v3001_v58 = vld [vmem:[%s5567_s3 + $0x200] sm:$0xf]  ;;  %v825_v5 = vrot.slane %v4620_v27, 2 }
 0x20e   :  { %815 = vst [vmem:[#allocation1 + $0x1] ss:$9 sm:$0xff] %v4236_v15  ;;  %v3624_v15 = vld [vmem:[%s5567_s3 + $0x204] sm:$0xf0]  ;;  %1436 = vmatpush.bf16.msra.mxu3 %v2750_v42  ;;  %v3627_v38 = vld [vmem:[%s5567_s3 + $0x224] sm:$0xf] }
 0x20f   :  { %v3002_v10 = vor.u32 %v3624_v15, %v3001_v58  ;;  %v2878_v58 = vor.u32 %v3591_v6, %v2875_v12  ;;  %v3019_v6 = vld [vmem:[%s5567_s3 + $0x228] sm:$0xf0]  ;;  %v3609_v12 = vld [vmem:[%s5567_s3 + $0x194] sm:$0xf] }
 0x211   :  { %1422 = vmatpush.bf16.msra.mxu1 %v3002_v10  ;;  %v824_v10 = vrot.slane %v803_v36, 4  ;;  %v2955_v36 = vld [vmem:[%s5567_s3 + $0x1a8] sm:$0xf0] }
 0x212   :  { %v2958_v13 = vor.u32 %v3611_v33, %v2955_v36  ;;  %v3317_v36 = vld [vmem:[%s5569_s5 + $0x1f8] sm:$0xf] }
 0x213   :  { %v836_v61 = vsel %vm106_vm7, %v824_v10, %v825_v5  ;;  %v2947_v5 = vld [vmem:[%s5567_s3 + $0x198] sm:$0xf0]  ;;  %v2939_v10 = vld [vmem:[%s5567_s3 + $0x188] sm:$0xf0] }
 0x214   :  { %v2950_v18 = vor.u32 %v3609_v12, %v2947_v5  ;;  %v3437_v12 = vld [vmem:[%s5569_s5 + $0x2e8] sm:$0xf]  ;;  %v3733_v5 = vld [vmem:[%s5569_s5 + $0x2f0] sm:$0xf0] }
 0x215   :  { %v4639_v40 = vld [vmem:[#allocation1] sm:$0xff] }
 0x216   :  { %817 = vst [vmem:[#allocation1] ss:$9 sm:$0xff] %v4212_v62  ;;  %v2899_v62 = vld [vmem:[%s5567_s3 + $0x138] sm:$0xf0] }
 0x217   :  { %818 = vst [vmem:[#allocation1 + $0x1] ss:$9 sm:$0xff] %v4244_v19  ;;  %v2902_v17 = vor.u32 %v3597_v45, %v2899_v62  ;;  %v3579_v19 = vld [vmem:[%s5567_s3 + $0xa4] sm:$0xf]  ;;  %v833_v45 = vsel %vm101_vm5, %v4277_v30, %v823_v20  ;;  %v3637_v62 = vld [vmem:[%s5567_s3 + $0x274] sm:$0xf] }
 0x218   :  { %842 = vst [vmem:[#allocation1 + $0x20] ss:$4 sm:$0xff] %v4253_v0  ;;  %v3595_v0 = vld [vmem:[%s5567_s3 + $0x124] sm:$0xf]  ;;  %v2830_v22 = vor.u32 %v3579_v19, %v2827_v3  ;;  %v3059_v30 = vld [vmem:[%s5567_s3 + $0x278] sm:$0xf0] }
 0x219   :  { %844 = vst [vmem:[#allocation1 + $0x21] ss:$4 sm:$0xff] %v4257_v21  ;;  %1461 = vmatpush.bf16.msra.mxu2 %v2902_v17  ;;  %v774_v21 = vrot.slane %v772_v35, 1  ;;  %v2894_v1 = vor.u32 %v3595_v0, %v2891_v63  ;;  %v3051_v17 = vld [vmem:[%s5567_s3 + $0x268] sm:$0xf0]  ;;  %v3062_v53 = vor.u32 %v3637_v62, %v3059_v30 }
 0x21a   :  { %1448 = vmatpush.bf16.msra.mxu0 %v2830_v22  ;;  %v3054_v60 = vor.u32 %v3635_v50, %v3051_v17  ;;  %v3607_v20 = vld [vmem:[%s5567_s3 + $0x184] sm:$0xf]  ;;  %v3125_v62 = vld [vmem:[%s5569_s5 + $0x78] sm:$0xf]  ;;  %v3233_v17 = vld [vmem:[%s5569_s5 + $0x150] sm:$0xf] }
 0x21b   :  { %v775_v14 = vor.u32 %v774_v21, %v770_v9  ;;  %v3615_v9 = vld [vmem:[%s5567_s3 + $0x1c4] sm:$0xf] }
 0x21c   :  { %v2974_v2 = vor.u32 %v3615_v9, %v2971_v25  ;;  %v3655_v30 = vld [vmem:[%s5569_s5 + $0x80] sm:$0xf0]  ;;  %v3676_v9 = vld [vmem:[%s5569_s5 + $0x128] sm:$0xf0]  ;;  %v3089_v25 = vld [vmem:[%s5569_s5 + $0x30] sm:$0xf] }
 0x21d   :  { %1462 = vmatpush.bf16.msra.mxu2 %v2894_v1  ;;  %v820_v15 = vrot.slane %v775_v14, 6  ;;  %v2990_v1 = vor.u32 %v3619_v7, %v2987_v49  ;;  %v2966_v14 = vor.u32 %v3613_v31, %v2963_v55  ;;  %v3126_v49 = vor.u32 %v3655_v30, %v3125_v62  ;;  %v3706_v31 = vld [vmem:[%s5569_s5 + $0x218] sm:$0xf0]  ;;  %v3660_v30 = vld [vmem:[%s5569_s5 + $0xac] sm:$0xf] }
 0x21e   :  { %v819_v28 = vld [vmem:[#allocation1] sm:$0xff]  ;;  %1449 = vmatpush.bf16.msra.mxu0 %v2822_v26  ;;  %v3730_v62 = vld [vmem:[%s5569_s5 + $0x2d8] sm:$0xf0] }
 0x21f   :  { %838 = vst [vmem:[#allocation1] ss:$4 sm:$0xff] %v746_v29  ;;  %v827_v27 = vsel %vm101_vm5, %v4261_v23, %v820_v15  ;;  %v2995_v23 = vld [vmem:[%s5567_s3 + $0x1f8] sm:$0xf0]  ;;  %v3631_v26 = vld [vmem:[%s5567_s3 + $0x244] sm:$0xf] }
 0x220   :  { %840 = vst [vmem:[#allocation1 + $0x1] ss:$4 sm:$0xff] %v752_v44  ;;  %v4715_v39 = vld.sshfl [vmem:[#allocation1 + $0x20] sm:$0xff pattern:$0x73625140]  ;;  %v831_v43 = vsel %vm336_vm8, %v827_v27, %v830_v11  ;;  %v2998_v19 = vor.u32 %v3621_v47, %v2995_v23  ;;  %v3038_v29 = vor.u32 %v3631_v26, %v3035_v24  ;;  %v2942_v27 = vor.u32 %v3607_v20, %v2939_v10 }
 0x221   :  { %1463 = vmatpush.bf16.msra.mxu2 %v2886_v57  ;;  %855 = vst [vmem:[#allocation1 + $0x22] ss:$4 sm:$0xff] %v4639_v40  ;;  %v837_v40 = vsel %vm336_vm8, %v833_v45, %v836_v61  ;;  %v3027_v57 = vld [vmem:[%s5567_s3 + $0x238] sm:$0xf0]  ;;  %v3623_v11 = vld [vmem:[%s5567_s3 + $0x204] sm:$0xf] }
 0x222   :  { %1450 = vmatpush.bf16.msra.mxu0 %v2814_v37  ;;  %857 = vst [vmem:[#allocation1 + $0x23] ss:$4 sm:$0xff] %v819_v28  ;;  %v3629_v28 = vld [vmem:[%s5567_s3 + $0x234] sm:$0xf]  ;;  %v3022_v37 = vor.u32 %v3627_v38, %v3019_v6  ;;  %v3011_v15 = vld [vmem:[%s5567_s3 + $0x218] sm:$0xf0] }
 0x223   :  { %v3030_v32 = vor.u32 %v3629_v28, %v3027_v57  ;;  %v3003_v61 = vld [vmem:[%s5567_s3 + $0x208] sm:$0xf0]  ;;  %v3685_v23 = vld [vmem:[%s5569_s5 + $0x170] sm:$0xf0]  ;;  %v3703_v38 = vld [vmem:[%s5569_s5 + $0x200] sm:$0xf0] }
 0x225   :  { %1464 = vmatpush.bf16.msra.mxu2 %v2878_v58  ;;  %v3625_v58 = vld [vmem:[%s5567_s3 + $0x214] sm:$0xf] }
 0x227   :  { %v845_v41 = vld.sshfl [vmem:[#allocation1] sm:$0xff pattern:$0x73625140]  ;;  %v846_v42 = vld.sshfl [vmem:[#allocation1 + $0x8] sm:$0xff pattern:$0x73625140] }
 0x228   :  { %v847_v35 = vld.sshfl [vmem:[#allocation1 + $0x10] sm:$0xff pattern:$0x73625140]  ;;  %v848_v46 = vld.sshfl [vmem:[#allocation1 + $0x18] sm:$0xff pattern:$0x73625140] }
 0x229   :  { %851 = vst [vmem:[#allocation1 + $0x2] ss:$4 sm:$0xff] %v831_v43  ;;  %v862_v44 = vld.sshfl [vmem:[#allocation1 + $0x20] sm:$0xff pattern:$0x73625140] }
 0x22a   :  { %853 = vst [vmem:[#allocation1 + $0x3] ss:$4 sm:$0xff] %v837_v40  ;;  %v871_v34 = vsel %vm336_vm8, %v4715_v39, %v862_v44  ;;  %v3014_v39 = vor.u32 %v3625_v58, %v3011_v15  ;;  %v3661_v43 = vld [vmem:[%s5569_s5 + $0xb0] sm:$0xf0]  ;;  %v3245_v40 = vld [vmem:[%s5569_s5 + $0x168] sm:$0xf]  ;;  %v3438_v58 = vor.u32 %v3733_v5, %v3437_v12 }
 0x22b   :  { %v3246_v7 = vor.u32 %v3685_v23, %v3245_v40  ;;  %v3197_v44 = vld [vmem:[%s5569_s5 + $0x108] sm:$0xf]  ;;  %v3700_v40 = vld [vmem:[%s5569_s5 + $0x1e8] sm:$0xf0]  ;;  %v3681_v12 = vld [vmem:[%s5569_s5 + $0x154] sm:$0xf] }
 0x22c   :  { %v3235_v5 = vld [vmem:[%s5569_s5 + $0x15c] sm:$0xf0] }
 0x231   :  { %v858_v51 = vld.sshfl [vmem:[#allocation1] sm:$0xff pattern:$0x73625140]  ;;  %v859_v52 = vld.sshfl [vmem:[#allocation1 + $0x8] sm:$0xff pattern:$0x73625140] }
 0x232   :  { %v863_v3 = vsel %vm336_vm8, %v845_v41, %v858_v51  ;;  %v865_v0 = vsel %vm336_vm8, %v846_v42, %v859_v52  ;;  %v860_v63 = vld.sshfl [vmem:[#allocation1 + $0x10] sm:$0xff pattern:$0x73625140]  ;;  %v861_v21 = vld.sshfl [vmem:[#allocation1 + $0x18] sm:$0xff pattern:$0x73625140]  ;;  %v3006_v41 = vor.u32 %v3623_v11, %v3003_v61 }
 0x233   :  { %1367 = vmatmul.bf16.vlgmr.msrb.gmra.mxu1 %v863_v3  ;;  %1381 = vmatmul.bf16.vlgmr.msrb.gmra.mxu3 %v865_v0  ;;  %v867_v54 = vsel %vm336_vm8, %v847_v35, %v860_v63  ;;  %v869_v22 = vsel %vm336_vm8, %v848_v46, %v861_v21  ;;  %v3149_v42 = vld [vmem:[%s5569_s5 + $0xa8] sm:$0xf]  ;;  %v3137_v35 = vld [vmem:[%s5569_s5 + $0x90] sm:$0xf]  ;;  %v3658_v46 = vld [vmem:[%s5569_s5 + $0x98] sm:$0xf0] }
 0x234   :  { %1395 = vmatmul.bf16.vlgmr.msrb.gmra.mxu0 %v867_v54  ;;  %1409 = vmatmul.bf16.vlgmr.msrb.gmra.mxu2 %v869_v22  ;;  %v3150_v45 = vor.u32 %v3661_v43, %v3149_v42  ;;  %v3138_v47 = vor.u32 %v3658_v46, %v3137_v35  ;;  %v3682_v51 = vld [vmem:[%s5569_s5 + $0x158] sm:$0xf0]  ;;  %v3113_v52 = vld [vmem:[%s5569_s5 + $0x60] sm:$0xf]  ;;  %v3101_v21 = vld [vmem:[%s5569_s5 + $0x48] sm:$0xf] }
 0x235   :  { %1471 = vmatpush.bf16.msrb.mxu1 %v2998_v19  ;;  %1485 = vmatpush.bf16.msrb.mxu3 %v3062_v53  ;;  %v3234_v19 = vor.u32 %v3682_v51, %v3233_v17  ;;  %v3652_v53 = vld [vmem:[%s5569_s5 + $0x68] sm:$0xf0]  ;;  %v3185_v11 = vld [vmem:[%s5569_s5 + $0xf0] sm:$0xf]  ;;  %v3670_v61 = vld [vmem:[%s5569_s5 + $0xf8] sm:$0xf0] }
 0x236   :  { %2218 = vmatpush.bf16.msrb.mxu0 %v3150_v45  ;;  %2231 = vmatpush.bf16.msrb.mxu2 %v3246_v7  ;;  %v3114_v63 = vor.u32 %v3652_v53, %v3113_v52  ;;  %v3065_v42 = vld [vmem:[%s5569_s5] sm:$0xf]  ;;  %v3640_v43 = vld [vmem:[%s5569_s5 + $0x8] sm:$0xf0]  ;;  %v3151_v7 = vld [vmem:[%s5569_s5 + $0xb4] sm:$0xf0] }
 0x237   :  { %v3305_v45 = vld [vmem:[%s5569_s5 + $0x1e0] sm:$0xf]  ;;  %v3066_v46 = vor.u32 %v3640_v43, %v3065_v42  ;;  %v3154_v51 = vor.u32 %v3660_v30, %v3151_v7  ;;  %v3173_v52 = vld [vmem:[%s5569_s5 + $0xd8] sm:$0xf]  ;;  %v3238_v42 = vor.u32 %v3681_v12, %v3235_v5  ;;  %v3115_v43 = vld [vmem:[%s5569_s5 + $0x6c] sm:$0xf0] }
 0x238   :  { %v3306_v23 = vor.u32 %v3700_v40, %v3305_v45  ;;  %v3257_v7 = vld [vmem:[%s5569_s5 + $0x180] sm:$0xf] }
 0x239   :  { %1472 = vmatpush.bf16.msrb.mxu1 %v2990_v1  ;;  %1486 = vmatpush.bf16.msrb.mxu3 %v3054_v60 }
 0x23a   :  { %2219 = vmatpush.bf16.msrb.mxu0 %v3138_v47  ;;  %2232 = vmatpush.bf16.msrb.mxu2 %v3234_v19  ;;  %v3425_v47 = vld [vmem:[%s5569_s5 + $0x2d0] sm:$0xf]  ;;  %v3667_v19 = vld [vmem:[%s5569_s5 + $0xe0] sm:$0xf0] }
 0x23b   :  { %v3426_v17 = vor.u32 %v3730_v62, %v3425_v47 }
 0x23d   :  { %1473 = vmatpush.bf16.msrb.mxu1 %v2982_v8  ;;  %1487 = vmatpush.bf16.msrb.mxu3 %v3046_v16  ;;  %v3209_v16 = vld [vmem:[%s5569_s5 + $0x120] sm:$0xf] }
 0x23e   :  { %2220 = vmatpush.bf16.msrb.mxu0 %v3126_v49  ;;  %v3210_v24 = vor.u32 %v3676_v9, %v3209_v16 }
 0x241   :  { %1474 = vmatpush.bf16.msrb.mxu1 %v2974_v2  ;;  %1488 = vmatpush.bf16.msrb.mxu3 %v3038_v29  ;;  %v3646_v2 = vld [vmem:[%s5569_s5 + $0x38] sm:$0xf0]  ;;  %v3329_v29 = vld [vmem:[%s5569_s5 + $0x210] sm:$0xf] }
 0x242   :  { %2221 = vmatpush.bf16.msrb.mxu0 %v3114_v63  ;;  %v3090_v28 = vor.u32 %v3646_v2, %v3089_v25  ;;  %v3330_v57 = vor.u32 %v3706_v31, %v3329_v29  ;;  %v3293_v63 = vld [vmem:[%s5569_s5 + $0x1c8] sm:$0xf]  ;;  %v3161_v25 = vld [vmem:[%s5569_s5 + $0xc0] sm:$0xf]  ;;  %v3684_v2 = vld [vmem:[%s5569_s5 + $0x16c] sm:$0xf] }
 0x243   :  { %1423 = vmatmul.bf16.vlgmr.msra.gmra.mxu1 %v871_v34  ;;  %1437 = vmatmul.bf16.vlgmr.msra.gmra.mxu3 %v863_v3  ;;  %v3221_v3 = vld [vmem:[%s5569_s5 + $0x138] sm:$0xf] }
 0x244   :  { %1451 = vmatmul.bf16.vlgmr.msra.gmra.mxu0 %v865_v0  ;;  %1465 = vmatmul.bf16.vlgmr.msra.gmra.mxu2 %v867_v54  ;;  %v3679_v0 = vld [vmem:[%s5569_s5 + $0x140] sm:$0xf0]  ;;  %v3649_v54 = vld [vmem:[%s5569_s5 + $0x50] sm:$0xf0] }
 0x245   :  { %1475 = vmatpush.bf16.msrb.mxu1 %v2966_v14  ;;  %1489 = vmatpush.bf16.msrb.mxu3 %v3030_v32  ;;  %v3222_v60 = vor.u32 %v3679_v0, %v3221_v3  ;;  %v3102_v56 = vor.u32 %v3649_v54, %v3101_v21  ;;  %v3673_v14 = vld [vmem:[%s5569_s5 + $0x110] sm:$0xf0]  ;;  %v3077_v32 = vld [vmem:[%s5569_s5 + $0x18] sm:$0xf]  ;;  %v3174_v0 = vor.u32 %v3667_v19, %v3173_v52 }
 0x246   :  { %v3198_v33 = vor.u32 %v3673_v14, %v3197_v44  ;;  %v3697_v21 = vld [vmem:[%s5569_s5 + $0x1d0] sm:$0xf0]  ;;  %v3413_v54 = vld [vmem:[%s5569_s5 + $0x2b8] sm:$0xf]  ;;  %v3694_v44 = vld [vmem:[%s5569_s5 + $0x1b8] sm:$0xf0] }
 0x247   :  { %2233 = vmatpush.bf16.msrb.mxu2 %v3222_v60  ;;  %2222 = vmatpush.bf16.msrb.mxu0 %v3102_v56  ;;  %v3294_v60 = vor.u32 %v3697_v21, %v3293_v63  ;;  %v3139_v56 = vld [vmem:[%s5569_s5 + $0x9c] sm:$0xf0] }
 0x249   :  { %1476 = vmatpush.bf16.msrb.mxu1 %v2958_v13  ;;  %1490 = vmatpush.bf16.msrb.mxu3 %v3022_v37  ;;  %v3318_v37 = vor.u32 %v3703_v38, %v3317_v36  ;;  %v3724_v36 = vld [vmem:[%s5569_s5 + $0x2a8] sm:$0xf0]  ;;  %v3654_v38 = vld [vmem:[%s5569_s5 + $0x7c] sm:$0xf] }
 0x24b   :  { %2234 = vmatpush.bf16.msrb.mxu2 %v3210_v24  ;;  %2223 = vmatpush.bf16.msrb.mxu0 %v3090_v28  ;;  %v3664_v24 = vld [vmem:[%s5569_s5 + $0xc8] sm:$0xf0] }
 0x24c   :  { %v3162_v28 = vor.u32 %v3664_v24, %v3161_v25 }
 0x24d   :  { %1477 = vmatpush.bf16.msrb.mxu1 %v2950_v18  ;;  %1491 = vmatpush.bf16.msrb.mxu3 %v3014_v39  ;;  %v4943_v18 = vld [vmem:[%s5568_s4] sm:$0x3] }
 0x24e   :  { %v956_v35 = vperm.slane %v4943_v18, 1 }
 0x24f   :  { %2235 = vmatpush.bf16.msrb.mxu2 %v3198_v33 }
 0x251   :  { %1478 = vmatpush.bf16.msrb.mxu1 %v2942_v27  ;;  %1492 = vmatpush.bf16.msrb.mxu3 %v3006_v41  ;;  %v955_v27 = vperm.slane %v4943_v18, 0  ;;  %v3186_v41 = vor.u32 %v3670_v61, %v3185_v11  ;;  %v3269_v61 = vld [vmem:[%s5569_s5 + $0x198] sm:$0xf] }
 0x253   :  { %2236 = vmatpush.bf16.msrb.mxu2 %v3186_v41  ;;  %v3389_v41 = vld [vmem:[%s5569_s5 + $0x288] sm:$0xf] }
 0x254   :  { %1479 = vmatmul.bf16.vlgmr.msrb.gmra.mxu1 %v869_v22  ;;  %1493 = vmatmul.bf16.vlgmr.msrb.gmra.mxu3 %v871_v34  ;;  %v3341_v22 = vld [vmem:[%s5569_s5 + $0x228] sm:$0xf]  ;;  %v3643_v34 = vld [vmem:[%s5569_s5 + $0x20] sm:$0xf0] }
 0x255   :  { %v3342_v59 = vor.u32 %v3709_v48, %v3341_v22  ;;  %v3078_v13 = vor.u32 %v3643_v34, %v3077_v32  ;;  %2257 = vmatpush.bf16.msra.mxu3 %v3438_v58  ;;  %v3657_v48 = vld [vmem:[%s5569_s5 + $0x94] sm:$0xf]  ;;  %v3401_v34 = vld [vmem:[%s5569_s5 + $0x2a0] sm:$0xf] }
 0x256   :  { %v3142_v9 = vor.u32 %v3657_v48, %v3139_v56 }
 0x257   :  { %2244 = vmatpush.bf16.msra.mxu1 %v3342_v59  ;;  %2224 = vmatpush.bf16.msrb.mxu0 %v3078_v13 }
 0x258   :  { %2237 = vmatpush.bf16.msrb.mxu2 %v3174_v0  ;;  %v3103_v0 = vld [vmem:[%s5569_s5 + $0x54] sm:$0xf0] }
 0x259   :  { %2258 = vmatpush.bf16.msra.mxu3 %v3426_v17  ;;  %v3377_v17 = vld [vmem:[%s5569_s5 + $0x270] sm:$0xf] }
 0x25b   :  { %2245 = vmatpush.bf16.msra.mxu1 %v3330_v57  ;;  %2225 = vmatpush.bf16.msrb.mxu0 %v3066_v46  ;;  %v3281_v57 = vld [vmem:[%s5569_s5 + $0x1b0] sm:$0xf]  ;;  %v3223_v46 = vld [vmem:[%s5569_s5 + $0x144] sm:$0xf0] }
 0x25c   :  { %v3282_v33 = vor.u32 %v3694_v44, %v3281_v57  ;;  %2238 = vmatpush.bf16.msrb.mxu2 %v3162_v28  ;;  %v3091_v28 = vld [vmem:[%s5569_s5 + $0x3c] sm:$0xf0] }
 0x25d   :  { %v3331_v57 = vld [vmem:[%s5569_s5 + $0x21c] sm:$0xf0] }
 0x25f   :  { %2246 = vmatpush.bf16.msra.mxu1 %v3318_v37  ;;  %2270 = vmatpush.bf16.msra.mxu0 %v3154_v51  ;;  %v3402_v37 = vor.u32 %v3724_v36, %v3401_v34 }
 0x263   :  { %2247 = vmatpush.bf16.msra.mxu1 %v3306_v23  ;;  %2271 = vmatpush.bf16.msra.mxu0 %v3142_v9 }
 0x267   :  { %2248 = vmatpush.bf16.msra.mxu1 %v3294_v60  ;;  %v3675_v60 = vld [vmem:[%s5569_s5 + $0x124] sm:$0xf] }
 0x26b   :  { %2249 = vmatpush.bf16.msra.mxu1 %v3282_v33  ;;  %v3199_v33 = vld [vmem:[%s5569_s5 + $0x114] sm:$0xf0] }
 0x2b0   :  { %v4852_v50 = vpop.f32.mrf.mxu1 }
 0x2b1   :  { %v4888_v8 = vpop.f32.mrf.mxu0  ;;  %v1369_v53 = vadd.f32 %v4852_v50, %v955_v27  ;;  %v3727_v50 = vld [vmem:[%s5569_s5 + $0x2c0] sm:$0xf0] }
 0x2b2   :  { %v3414_v16 = vor.u32 %v3727_v50, %v3413_v54  ;;  %v3211_v50 = vld [vmem:[%s5569_s5 + $0x12c] sm:$0xf0] }
 0x2b4   :  { %2259 = vmatpush.bf16.msra.mxu3 %v3414_v16 }
 0x2b6   :  { %v4881_v1 = vpop.f32.mrf.mxu3 }
 0x2b7   :  { %v4899_v26 = vpop.f32.mrf.mxu2  ;;  %v1383_v59 = vadd.f32 %v4881_v1, %v1369_v53  ;;  %v3247_v1 = vld [vmem:[%s5569_s5 + $0x174] sm:$0xf0]  ;;  %v3718_v53 = vld [vmem:[%s5569_s5 + $0x278] sm:$0xf0] }
 0x2b8   :  { %v4886_v4 = vpop.f32.mrf.mxu1  ;;  %v3250_v32 = vor.u32 %v3684_v2, %v3247_v1  ;;  %2260 = vmatpush.bf16.msra.mxu3 %v3402_v37  ;;  %v3378_v16 = vor.u32 %v3718_v53, %v3377_v17  ;;  %v3214_v1 = vor.u32 %v3675_v60, %v3211_v50  ;;  %v3307_v17 = vld [vmem:[%s5569_s5 + $0x1ec] sm:$0xf0]  ;;  %v3666_v53 = vld [vmem:[%s5569_s5 + $0xdc] sm:$0xf]  ;;  %v3415_v50 = vld [vmem:[%s5569_s5 + $0x2c4] sm:$0xf0] }
 0x2b9   :  { %v4938_v15 = vpop.f32.mrf.mxu0  ;;  %v1371_v14 = vadd.f32 %v4886_v4, %v955_v27  ;;  %v3127_v4 = vld [vmem:[%s5569_s5 + $0x84] sm:$0xf0]  ;;  %v1397_v58 = vadd.f32 %v4888_v8, %v1383_v59  ;;  %v3691_v27 = vld [vmem:[%s5569_s5 + $0x1a0] sm:$0xf0]  ;;  %v3721_v8 = vld [vmem:[%s5569_s5 + $0x290] sm:$0xf0] }
 0x2ba   :  { %v3130_v11 = vor.u32 %v3654_v38, %v3127_v4  ;;  %2283 = vmatpush.bf16.msra.mxu2 %v3250_v32  ;;  %v3270_v45 = vor.u32 %v3691_v27, %v3269_v61  ;;  %v3390_v62 = vor.u32 %v3721_v8, %v3389_v41  ;;  %v3672_v32 = vld [vmem:[%s5569_s5 + $0x10c] sm:$0xf]  ;;  %v3319_v61 = vld [vmem:[%s5569_s5 + $0x204] sm:$0xf0]  ;;  %v3439_v41 = vld [vmem:[%s5569_s5 + $0x2f4] sm:$0xf0] }
 0x2bb   :  { %v1411_v51 = vadd.f32 %v4899_v26, %v1397_v58  ;;  %v3708_v26 = vld [vmem:[%s5569_s5 + $0x22c] sm:$0xf]  ;;  %v3642_v58 = vld [vmem:[%s5569_s5 + $0x1c] sm:$0xf] }
 0x2bc   :  { %2272 = vmatpush.bf16.msra.mxu0 %v3130_v11  ;;  %2250 = vmatpush.bf16.msra.mxu1 %v3270_v45  ;;  %v3712_v4 = vld [vmem:[%s5569_s5 + $0x248] sm:$0xf0]  ;;  %v3202_v11 = vor.u32 %v3672_v32, %v3199_v33  ;;  %v3726_v60 = vld [vmem:[%s5569_s5 + $0x2bc] sm:$0xf]  ;;  %v3391_v33 = vld [vmem:[%s5569_s5 + $0x294] sm:$0xf0] }
 0x2bd   :  { %2261 = vmatpush.bf16.msra.mxu3 %v3390_v62  ;;  %v3732_v27 = vld [vmem:[%s5569_s5 + $0x2ec] sm:$0xf]  ;;  %v3639_v62 = vld [vmem:[%s5569_s5 + $0x4] sm:$0xf] }
 0x2be   :  { %v4910_v55 = vpop.f32.mrf.mxu3  ;;  %2284 = vmatpush.bf16.msra.mxu2 %v3238_v42  ;;  %v3720_v32 = vld [vmem:[%s5569_s5 + $0x28c] sm:$0xf] }
 0x2bf   :  { %v4945_v20 = vpop.f32.mrf.mxu2  ;;  %v1385_v18 = vadd.f32 %v4910_v55, %v1371_v14  ;;  %v3651_v55 = vld [vmem:[%s5569_s5 + $0x64] sm:$0xf] }
 0x2c0   :  { %v4930_v6 = vpop.f32.mrf.mxu1  ;;  %v3118_v30 = vor.u32 %v3651_v55, %v3115_v43  ;;  %v3669_v55 = vld [vmem:[%s5569_s5 + $0xf4] sm:$0xf]  ;;  %v3187_v43 = vld [vmem:[%s5569_s5 + $0xfc] sm:$0xf0] }
 0x2c1   :  { %v1452_v49 = vpop.f32.mrf.mxu0  ;;  %v1399_v52 = vadd.f32 %v4938_v15, %v1385_v18  ;;  %v3343_v15 = vld [vmem:[%s5569_s5 + $0x234] sm:$0xf0]  ;;  %v1425_v54 = vadd.f32 %v4930_v6, %v1411_v51  ;;  %2262 = vmatpush.bf16.msra.mxu3 %v3378_v16  ;;  %v3079_v18 = vld [vmem:[%s5569_s5 + $0x24] sm:$0xf0]  ;;  %v3729_v51 = vld [vmem:[%s5569_s5 + $0x2d4] sm:$0xf] }
 0x2c2   :  { %2273 = vmatpush.bf16.msra.mxu0 %v3118_v30  ;;  %v3365_v6 = vld [vmem:[%s5569_s5 + $0x258] sm:$0xf]  ;;  %v3346_v2 = vor.u32 %v3708_v26, %v3343_v15  ;;  %v3067_v30 = vld [vmem:[%s5569_s5 + $0xc] sm:$0xf0]  ;;  %v3696_v15 = vld [vmem:[%s5569_s5 + $0x1cc] sm:$0xf] }
 0x2c3   :  { %v1413_v25 = vadd.f32 %v4945_v20, %v1399_v52  ;;  %v3705_v20 = vld [vmem:[%s5569_s5 + $0x214] sm:$0xf]  ;;  %v1499_v34 = vmax.f32 %v1425_v54, 0.0  ;;  %v3427_v52 = vld [vmem:[%s5569_s5 + $0x2dc] sm:$0xf0] }
 0x2c4   :  { %v3334_v5 = vor.u32 %v3705_v20, %v3331_v57  ;;  %v3430_v26 = vor.u32 %v3729_v51, %v3427_v52  ;;  %v3295_v54 = vld [vmem:[%s5569_s5 + $0x1d4] sm:$0xf0] }
 0x2c5   :  { %v3298_v16 = vor.u32 %v3696_v15, %v3295_v54  ;;  %v3683_v15 = vld [vmem:[%s5569_s5 + $0x160] sm:$0xf0] }
 0x2c6   :  { %v1438_v39 = vpop.f32.mrf.mxu3 }
 0x2c7   :  { %v1439_v22 = vadd.f32 %v1438_v39, %v956_v35  ;;  %v1466_v29 = vpop.f32.mrf.mxu2 }
 0x2c8   :  { %v4947_v10 = vpop.f32.mrf.mxu1 }
 0x2c9   :  { %v1453_v13 = vadd.f32 %v1452_v49, %v1439_v22  ;;  %v1454_v47 = vpop.f32.mrf.mxu0  ;;  %v3688_v49 = vld [vmem:[%s5569_s5 + $0x188] sm:$0xf0]  ;;  %v1427_v44 = vadd.f32 %v4947_v10, %v1413_v25  ;;  %v3353_v10 = vld [vmem:[%s5569_s5 + $0x240] sm:$0xf]  ;;  %v3418_v25 = vor.u32 %v3726_v60, %v3415_v50  ;;  %v3653_v60 = vld [vmem:[%s5569_s5 + $0x70] sm:$0xf0] }
 0x2ca   :  { %v3258_v22 = vor.u32 %v3688_v49, %v3257_v7  ;;  %v3354_v45 = vor.u32 %v3712_v4, %v3353_v10  ;;  %v3699_v7 = vld [vmem:[%s5569_s5 + $0x1e4] sm:$0xf]  ;;  %v3190_v49 = vor.u32 %v3669_v55, %v3187_v43  ;;  %v3717_v10 = vld [vmem:[%s5569_s5 + $0x274] sm:$0xf]  ;;  %v3379_v4 = vld [vmem:[%s5569_s5 + $0x27c] sm:$0xf0] }
 0x2cb   :  { %v1467_v40 = vadd.f32 %v1466_v29, %v1453_v13  ;;  %v3715_v29 = vld [vmem:[%s5569_s5 + $0x260] sm:$0xf0]  ;;  %v1501_v42 = vmax.f32 %v1427_v44, 0.0  ;;  %v3690_v44 = vld [vmem:[%s5569_s5 + $0x19c] sm:$0xf] }
 0x2cc   :  { %2251 = vmatpush.bf16.msra.mxu1 %v3258_v22  ;;  %v3366_v13 = vor.u32 %v3715_v29, %v3365_v6  ;;  %v3723_v29 = vld [vmem:[%s5569_s5 + $0x2a4] sm:$0xf]  ;;  %v3145_v43 = vld [vmem:[%s5569_s5 + $0x98] sm:$0xf] }
 0x2ce   :  { %v1440_v3 = vpop.f32.mrf.mxu3  ;;  %2263 = vmatpush.bf16.msra.mxu3 %v3366_v13  ;;  %v3394_v13 = vor.u32 %v3720_v32, %v3391_v33 }
 0x2cf   :  { %v1441_v39 = vadd.f32 %v1440_v3, %v956_v35  ;;  %v3678_v35 = vld [vmem:[%s5569_s5 + $0x13c] sm:$0xf]  ;;  %v3648_v3 = vld [vmem:[%s5569_s5 + $0x4c] sm:$0xf]  ;;  %v1468_v48 = vpop.f32.mrf.mxu2 }
 0x2d0   :  { %v3226_v21 = vor.u32 %v3678_v35, %v3223_v46  ;;  %v3106_v9 = vor.u32 %v3648_v3, %v3103_v0  ;;  %2296 = vmatpush.bf16.msrb.mxu1 %v3346_v2  ;;  %v3082_v35 = vor.u32 %v3642_v58, %v3079_v18  ;;  %v3175_v3 = vld [vmem:[%s5569_s5 + $0xe4] sm:$0xf0]  ;;  %v3070_v0 = vor.u32 %v3639_v62, %v3067_v30  ;;  %v3283_v2 = vld [vmem:[%s5569_s5 + $0x1bc] sm:$0xf0]  ;;  %v3157_v58 = vld [vmem:[%s5569_s5 + $0xb0] sm:$0xf] }
 0x2d1   :  { %v1480_v31 = vpop.f32.mrf.mxu1  ;;  %v1455_v19 = vadd.f32 %v1454_v47, %v1441_v39  ;;  %v3702_v39 = vld [vmem:[%s5569_s5 + $0x1fc] sm:$0xf]  ;;  %v3178_v22 = vor.u32 %v3666_v53, %v3175_v3  ;;  %v3711_v62 = vld [vmem:[%s5569_s5 + $0x244] sm:$0xf]  ;;  %v3355_v30 = vld [vmem:[%s5569_s5 + $0x24c] sm:$0xf0] }
 0x2d2   :  { %v1481_v63 = vadd.f32 %v1480_v31, %v1467_v40  ;;  %v3645_v31 = vld [vmem:[%s5569_s5 + $0x34] sm:$0xf]  ;;  %2285 = vmatpush.bf16.msra.mxu2 %v3226_v21  ;;  %2274 = vmatpush.bf16.msra.mxu0 %v3106_v9  ;;  %v3322_v47 = vor.u32 %v3702_v39, %v3319_v61  ;;  %v3310_v21 = vor.u32 %v3699_v7, %v3307_v17  ;;  %v3662_v18 = vld [vmem:[%s5569_s5 + $0xb8] sm:$0xf0]  ;;  %v3656_v53 = vld [vmem:[%s5569_s5 + $0x88] sm:$0xf0] }
 0x2d3   :  { %v1469_v24 = vadd.f32 %v1468_v48, %v1455_v19  ;;  %v3094_v37 = vor.u32 %v3645_v31, %v3091_v28  ;;  %2264 = vmatpush.bf16.msra.mxu3 %v3354_v45  ;;  %v3158_v55 = vor.u32 %v3662_v18, %v3157_v58  ;;  %v3659_v45 = vld [vmem:[%s5569_s5 + $0xa0] sm:$0xf0]  ;;  %v3358_v3 = vor.u32 %v3711_v62, %v3355_v30  ;;  %v3674_v58 = vld [vmem:[%s5569_s5 + $0x118] sm:$0xf0] }
 0x2d4   :  { %2297 = vmatpush.bf16.msrb.mxu1 %v3334_v5  ;;  %v3146_v17 = vor.u32 %v3659_v45, %v3145_v43 }
 0x2d6   :  { %2286 = vmatpush.bf16.msra.mxu2 %v3214_v1  ;;  %2275 = vmatpush.bf16.msra.mxu0 %v3094_v37  ;;  %v3403_v1 = vld [vmem:[%s5569_s5 + $0x2ac] sm:$0xf0] }
 0x2d7   :  { %v1494_v23 = vpop.f32.mrf.mxu3  ;;  %v3406_v57 = vor.u32 %v3723_v29, %v3403_v1  ;;  %v3259_v37 = vld [vmem:[%s5569_s5 + $0x18c] sm:$0xf0]  ;;  %v3650_v29 = vld [vmem:[%s5569_s5 + $0x58] sm:$0xf0] }
 0x2d8   :  { %v1495_v56 = vadd.f32 %v1494_v23, %v1481_v63  ;;  %v3442_v23 = vor.u32 %v3732_v27, %v3439_v41  ;;  %2298 = vmatpush.bf16.msrb.mxu1 %v3322_v47  ;;  %v3714_v41 = vld [vmem:[%s5569_s5 + $0x25c] sm:$0xf] }
 0x2d9   :  { %v1482_v59 = vpop.f32.mrf.mxu1 }
 0x2da   :  { %v1483_v14 = vadd.f32 %v1482_v59, %v1469_v24  ;;  %v1500_v36 = vmax.f32 %v1495_v56, 0.0  ;;  %2287 = vmatpush.bf16.msra.mxu2 %v3202_v11  ;;  %2276 = vmatpush.bf16.msra.mxu0 %v3082_v35  ;;  %v3663_v56 = vld [vmem:[%s5569_s5 + $0xc4] sm:$0xf]  ;;  %v3163_v59 = vld [vmem:[%s5569_s5 + $0xcc] sm:$0xf0]  ;;  %v3382_v11 = vor.u32 %v3717_v10, %v3379_v4 }
 0x2db   :  { %2309 = vmatpush.bf16.msrb.mxu3 %v3442_v23  ;;  %v3693_v24 = vld [vmem:[%s5569_s5 + $0x1b4] sm:$0xf]  ;;  %v3166_v28 = vor.u32 %v3663_v56, %v3163_v59  ;;  %v3229_v56 = vld [vmem:[%s5569_s5 + $0x140] sm:$0xf] }
 0x2dc   :  { %v1503_v46 = vmax.f32 %v1499_v34, %v1500_v36  ;;  %2299 = vmatpush.bf16.msrb.mxu1 %v3310_v21  ;;  %v3286_v20 = vor.u32 %v3693_v24, %v3283_v2  ;;  %v3687_v34 = vld [vmem:[%s5569_s5 + $0x184] sm:$0xf]  ;;  %v3109_v2 = vld [vmem:[%s5569_s5 + $0x50] sm:$0xf] }
 0x2dd   :  { %v3262_v39 = vor.u32 %v3687_v34, %v3259_v37  ;;  %v3110_v32 = vor.u32 %v3650_v29, %v3109_v2  ;;  %v3097_v34 = vld [vmem:[%s5569_s5 + $0x38] sm:$0xf]  ;;  %v3707_v37 = vld [vmem:[%s5569_s5 + $0x220] sm:$0xf0] }
 0x2de   :  { %2288 = vmatpush.bf16.msra.mxu2 %v3190_v49  ;;  %2277 = vmatpush.bf16.msra.mxu0 %v3070_v0  ;;  %v3686_v49 = vld [vmem:[%s5569_s5 + $0x178] sm:$0xf0]  ;;  %v3289_v29 = vld [vmem:[%s5569_s5 + $0x1b8] sm:$0xf] }
 0x2df   :  { %v1496_v38 = vpop.f32.mrf.mxu3  ;;  %2310 = vmatpush.bf16.msrb.mxu3 %v3430_v26  ;;  %v3241_v26 = vld [vmem:[%s5569_s5 + $0x158] sm:$0xf] }
 0x2e0   :  { %v1497_v12 = vadd.f32 %v1496_v38, %v1483_v14  ;;  %2300 = vmatpush.bf16.msrb.mxu1 %v3298_v16  ;;  %v3271_v14 = vld [vmem:[%s5569_s5 + $0x1a4] sm:$0xf0]  ;;  %v3680_v16 = vld [vmem:[%s5569_s5 + $0x148] sm:$0xf0] }
 0x2e1   :  { %v3274_v38 = vor.u32 %v3690_v44, %v3271_v14  ;;  %v3230_v1 = vor.u32 %v3680_v16, %v3229_v56  ;;  %v3677_v44 = vld [vmem:[%s5569_s5 + $0x130] sm:$0xf0]  ;;  %v3728_v16 = vld [vmem:[%s5569_s5 + $0x2c8] sm:$0xf0] }
 0x2e2   :  { %v1502_v8 = vmax.f32 %v1497_v12, 0.0  ;;  %2289 = vmatpush.bf16.msra.mxu2 %v3178_v22  ;;  %v3121_v22 = vld [vmem:[%s5569_s5 + $0x68] sm:$0xf] }
 0x2e3   :  { %2311 = vmatpush.bf16.msrb.mxu3 %v3418_v25  ;;  %v3122_v25 = vor.u32 %v3653_v60, %v3121_v22 }
 0x2e4   :  { %v1504_v40 = vmax.f32 %v1501_v42, %v1502_v8  ;;  %2301 = vmatpush.bf16.msrb.mxu1 %v3286_v20  ;;  %v3367_v42 = vld [vmem:[%s5569_s5 + $0x264] sm:$0xf0] }
 0x2e5   :  { %v3370_v47 = vor.u32 %v3714_v41, %v3367_v42  ;;  %v3644_v41 = vld [vmem:[%s5569_s5 + $0x28] sm:$0xf0]  ;;  %v3325_v42 = vld [vmem:[%s5569_s5 + $0x200] sm:$0xf] }
 0x2e6   :  { %v1505_v19 = vmax.f32 %v1503_v46, %v1504_v40  ;;  %2290 = vmatpush.bf16.msra.mxu2 %v3166_v28  ;;  %v3253_v40 = vld [vmem:[%s5569_s5 + $0x170] sm:$0xf]  ;;  %v3710_v28 = vld [vmem:[%s5569_s5 + $0x238] sm:$0xf0] }
 0x2e7   :  { %2312 = vmatpush.bf16.msrb.mxu3 %v3406_v57  ;;  %v3217_v57 = vld [vmem:[%s5569_s5 + $0x128] sm:$0xf] }
 0x2e8   :  { %v1506_v63 = vpack.c.bf16 %v1505_v19, %v1505_v19  ;;  %2302 = vmatpush.bf16.msrb.mxu1 %v3274_v38  ;;  %v3133_v19 = vld [vmem:[%s5569_s5 + $0x80] sm:$0xf]  ;;  %v3337_v38 = vld [vmem:[%s5569_s5 + $0x218] sm:$0xf]  ;;  %v3218_v4 = vor.u32 %v3677_v44, %v3217_v57 }
 0x2e9   :  { %v3134_v54 = vor.u32 %v3656_v53, %v3133_v19  ;;  %v3313_v19 = vld [vmem:[%s5569_s5 + $0x1e8] sm:$0xf]  ;;  %v3701_v53 = vld [vmem:[%s5569_s5 + $0x1f0] sm:$0xf0]  ;;  %v3277_v44 = vld [vmem:[%s5569_s5 + $0x1a0] sm:$0xf] }
 0x2ea   :  { %v1508_v48 = vrot.slane %v1506_v63, 2  ;;  %v3314_v22 = vor.u32 %v3701_v53, %v3313_v19  ;;  %v3744_v19 = vld [vmem:[%s5571_s7 + $0x48] sm:$0xff] }
 0x2eb   :  { %2313 = vmatpush.bf16.msrb.mxu3 %v3394_v13 }
 0x2ec   :  { %v5202_v9 = vsel %vm101_vm5, %v1506_v63, %v1508_v48  ;;  %v1512_v6 = vsel %vm103_vm6, %v1506_v63, %v1508_v48  ;;  %2303 = vmatpush.bf16.msrb.mxu1 %v3262_v39  ;;  %v3254_v63 = vor.u32 %v3686_v49, %v3253_v40  ;;  %v3242_v48 = vor.u32 %v3683_v15, %v3241_v26  ;;  %v3734_v40 = vld [vmem:[%s5569_s5 + $0x2f8] sm:$0xf0]  ;;  %v3073_v49 = vld [vmem:[%s5569_s5 + $0x8] sm:$0xf]  ;;  %v3181_v26 = vld [vmem:[%s5569_s5 + $0xe0] sm:$0xf] }
 0x2ed   :  { %v5214_v31 = vrot.slane %v1512_v6, 2  ;;  %1515 = vst [vmem:[#allocation1] ss:$4 sm:$0xff] %v5202_v9  ;;  %v3668_v15 = vld [vmem:[%s5569_s5 + $0xe8] sm:$0xf0] }
 0x2ee   :  { %v3182_v56 = vor.u32 %v3668_v15, %v3181_v26 }
 0x2ef   :  { %1520 = vst [vmem:[#allocation1 + $0x20] ss:$4 sm:$0xff] %v5214_v31  ;;  %2314 = vmatpush.bf16.msrb.mxu3 %v3382_v11  ;;  %v3338_v11 = vor.u32 %v3707_v37, %v3337_v38  ;;  %v3689_v38 = vld [vmem:[%s5569_s5 + $0x190] sm:$0xf0]  ;;  %v3385_v37 = vld [vmem:[%s5569_s5 + $0x278] sm:$0xf] }
 0x2f3   :  { %2315 = vmatpush.bf16.msrb.mxu3 %v3370_v47  ;;  %v3193_v47 = vld [vmem:[%s5569_s5 + $0xf8] sm:$0xf] }
 0x2f4   :  { %v1516_v36 = vld.sshfl [vmem:[#allocation1] sm:$0xff pattern:$0x73625140] }
 0x2f5   :  { %1529 = vst [vmem:[#allocation1] ss:$4 sm:$0xff] %v5202_v9  ;;  %v1523_v61 = vunpack.c.l.b16 %v1516_v36  ;;  %v3647_v36 = vld [vmem:[%s5569_s5 + $0x40] sm:$0xf0] }
 0x2f6   :  { %v1521_v12 = vld.sshfl [vmem:[#allocation1 + $0x20] sm:$0xff pattern:$0x73625140]  ;;  %v3098_v39 = vor.u32 %v3647_v36, %v3097_v34  ;;  %v3265_v36 = vld [vmem:[%s5569_s5 + $0x188] sm:$0xf] }
 0x2f7   :  { %v1524_v5 = vunpack.c.l.b16 %v1521_v12  ;;  %1533 = vst [vmem:[#allocation1 + $0x20] ss:$4 sm:$0xff] %v5214_v31  ;;  %2316 = vmatpush.bf16.msrb.mxu3 %v3358_v3  ;;  %v3205_v12 = vld [vmem:[%s5569_s5 + $0x110] sm:$0xf] }
 0x2f9   :  { %v1525_v27 = vrot.slane %v1524_v5, 7 }
 0x2fb   :  { %v1526_v8 = vsel %vm618_vm11, %v1525_v27, %v1523_v61  ;;  %v3085_v27 = vld [vmem:[%s5569_s5 + $0x20] sm:$0xf] }
 0x2fc   :  { %v5266_v35 = vpack.c.b16 %v1526_v8, %v1526_v8  ;;  %v1530_v46 = vld.sshfl [vmem:[#allocation1] sm:$0xff pattern:$0x73625140]  ;;  %v3704_v8 = vld [vmem:[%s5569_s5 + $0x208] sm:$0xf0]  ;;  %v3086_v30 = vor.u32 %v3644_v41, %v3085_v27  ;;  %v3741_v27 = vld [vmem:[%s5571_s7 + $0x30] sm:$0xff] }
 0x2fd   :  { %v1536_v23 = vunpack.c.l.b16 %v1530_v46  ;;  %1542 = vst [vmem:[#allocation1] ss:$4 sm:$0xff] %v5202_v9  ;;  %v3445_v46 = vld [vmem:[%s5569_s5 + $0x2f0] sm:$0xf]  ;;  %v3740_v41 = vld [vmem:[%s5571_s7 + $0x28] sm:$0xff] }
 0x2fe   :  { %2226 = vmatmul.bf16.vlgmr.msrb.gmra.mxu0 %v5266_v35  ;;  %v1534_v7 = vld.sshfl [vmem:[#allocation1 + $0x20] sm:$0xff pattern:$0x73625140] }
 0x2ff   :  { %2322 = vmatpush.bf16.msrb.mxu0 %v3158_v55  ;;  %v1537_v51 = vunpack.c.l.b16 %v1534_v7  ;;  %v1538_v52 = vrot.slane %v1536_v23, 1  ;;  %1546 = vst [vmem:[#allocation1 + $0x20] ss:$4 sm:$0xff] %v5214_v31  ;;  %v3206_v55 = vor.u32 %v3674_v58, %v3205_v12  ;;  %v3671_v23 = vld [vmem:[%s5569_s5 + $0x100] sm:$0xf0]  ;;  %v3326_v7 = vor.u32 %v3704_v8, %v3325_v42  ;;  %v3738_v42 = vld [vmem:[%s5571_s7 + $0x18] sm:$0xff] }
 0x300   :  { %v3194_v3 = vor.u32 %v3671_v23, %v3193_v47  ;;  %v3373_v12 = vld [vmem:[%s5569_s5 + $0x260] sm:$0xf]  ;;  %v3750_v8 = vld [vmem:[%s5571_s7 + $0x78] sm:$0xff] }
 0x301   :  { %v1539_v0 = vsel %vm618_vm11, %v1537_v51, %v1538_v52  ;;  %v3446_v51 = vor.u32 %v3734_v40, %v3445_v46  ;;  %v3641_v52 = vld [vmem:[%s5569_s5 + $0x10] sm:$0xf0]  ;;  %v3736_v46 = vld [vmem:[%s5571_s7 + $0x8] sm:$0xff]  ;;  %v3735_v47 = vld [vmem:[%s5571_s7] sm:$0xff] }
 0x302   :  { %v5290_v21 = vpack.c.b16 %v1539_v0, %v1539_v0  ;;  %v3433_v0 = vld [vmem:[%s5569_s5 + $0x2d8] sm:$0xf]  ;;  %v3748_v40 = vld [vmem:[%s5571_s7 + $0x68] sm:$0xff]  ;;  %v3747_v23 = vld [vmem:[%s5571_s7 + $0x60] sm:$0xff] }
 0x303   :  { %2323 = vmatpush.bf16.msrb.mxu0 %v3146_v17 }
 0x304   :  { %2239 = vmatmul.bf16.vlgmr.msrb.gmra.mxu2 %v5290_v21  ;;  %v1543_v50 = vld.sshfl [vmem:[#allocation1] sm:$0xff pattern:$0x73625140] }
 0x305   :  { %2335 = vmatpush.bf16.msrb.mxu2 %v3254_v63  ;;  %v1549_v59 = vunpack.c.l.b16 %v1543_v50  ;;  %1556 = vst [vmem:[#allocation1] ss:$4 sm:$0xff] %v5202_v9  ;;  %v3349_v9 = vld [vmem:[%s5569_s5 + $0x230] sm:$0xf]  ;;  %v3731_v63 = vld [vmem:[%s5569_s5 + $0x2e0] sm:$0xf0] }
 0x306   :  { %v1547_v6 = vld.sshfl [vmem:[#allocation1 + $0x20] sm:$0xff pattern:$0x73625140]  ;;  %v3350_v33 = vor.u32 %v3710_v28, %v3349_v9  ;;  %v3434_v60 = vor.u32 %v3731_v63, %v3433_v0  ;;  %v3301_v50 = vld [vmem:[%s5569_s5 + $0x1d0] sm:$0xf]  ;;  %v3754_v63 = vld [vmem:[%s5571_s7 + $0x98] sm:$0xff] }
 0x307   :  { %2324 = vmatpush.bf16.msrb.mxu0 %v3134_v54  ;;  %v1550_v24 = vunpack.c.l.b16 %v1547_v6  ;;  %1560 = vst [vmem:[#allocation1 + $0x20] ss:$4 sm:$0xff] %v5214_v31  ;;  %v1551_v20 = vrot.slane %v1549_v59, 2  ;;  %v3074_v54 = vor.u32 %v3641_v52, %v3073_v49  ;;  %v3421_v59 = vld [vmem:[%s5569_s5 + $0x2c0] sm:$0xf]  ;;  %v3745_v49 = vld [vmem:[%s5571_s7 + $0x50] sm:$0xff] }
 0x308   :  { %v3169_v6 = vld [vmem:[%s5569_s5 + $0xc8] sm:$0xf]  ;;  %v3422_v2 = vor.u32 %v3728_v16, %v3421_v59  ;;  %v3695_v9 = vld [vmem:[%s5569_s5 + $0x1c0] sm:$0xf0]  ;;  %v1698_v52 = vld [vmem:[%s5570_s6] sm:$0x7] }
 0x309   :  { %2336 = vmatpush.bf16.msrb.mxu2 %v3242_v48  ;;  %v1552_v31 = vrot.slane %v1550_v24, 1  ;;  %v3698_v48 = vld [vmem:[%s5569_s5 + $0x1d8] sm:$0xf0]  ;;  %v3743_v0 = vld [vmem:[%s5571_s7 + $0x40] sm:$0xff] }
 0x30a   :  { %v3302_v24 = vor.u32 %v3698_v48, %v3301_v50  ;;  %v3752_v50 = vld [vmem:[%s5571_s7 + $0x88] sm:$0xff] }
 0x30b   :  { %2325 = vmatpush.bf16.msrb.mxu0 %v3122_v25  ;;  %v1553_v14 = vsel %vm618_vm11, %v1552_v31, %v1551_v20  ;;  %v3665_v25 = vld [vmem:[%s5569_s5 + $0xd0] sm:$0xf0]  ;;  %v3290_v31 = vor.u32 %v3695_v9, %v3289_v29  ;;  %v3751_v9 = vld [vmem:[%s5571_s7 + $0x80] sm:$0xff] }
 0x30c   :  { %v5341_v13 = vpack.c.b16 %v1553_v14, %v1553_v14  ;;  %v1557_v10 = vld.sshfl [vmem:[#allocation1] sm:$0xff pattern:$0x73625140]  ;;  %v3170_v28 = vor.u32 %v3665_v25, %v3169_v6  ;;  %v3725_v20 = vld [vmem:[%s5569_s5 + $0x2b0] sm:$0xf0] }
 0x30d   :  { %2337 = vmatpush.bf16.msrb.mxu2 %v3230_v1  ;;  %v1563_v5 = vunpack.c.l.b16 %v1557_v10  ;;  %v3409_v1 = vld [vmem:[%s5569_s5 + $0x2a8] sm:$0xf]  ;;  %v3692_v14 = vld [vmem:[%s5569_s5 + $0x1a8] sm:$0xf0]  ;;  %v3719_v10 = vld [vmem:[%s5569_s5 + $0x280] sm:$0xf0] }
 0x30e   :  { %2252 = vmatmul.bf16.vlgmr.msra.gmra.mxu1 %v5341_v13  ;;  %2278 = vmatmul.bf16.vlgmr.msra.gmra.mxu0 %v5266_v35  ;;  %v1561_v18 = vld.sshfl [vmem:[#allocation1 + $0x20] sm:$0xff pattern:$0x73625140]  ;;  %v3410_v57 = vor.u32 %v3725_v20, %v3409_v1 }
 0x30f   :  { %2326 = vmatpush.bf16.msrb.mxu0 %v3110_v32  ;;  %2348 = vmatpush.bf16.msra.mxu1 %v3350_v33  ;;  %v1564_v61 = vunpack.c.l.b16 %v1561_v18  ;;  %v1565_v43 = vrot.slane %v1563_v5, 3  ;;  %v3397_v32 = vld [vmem:[%s5569_s5 + $0x290] sm:$0xf]  ;;  %v3278_v33 = vor.u32 %v3692_v14, %v3277_v44  ;;  %v3716_v5 = vld [vmem:[%s5569_s5 + $0x268] sm:$0xf0] }
 0x310   :  { %v3374_v58 = vor.u32 %v3716_v5, %v3373_v12  ;;  %v3361_v18 = vld [vmem:[%s5569_s5 + $0x248] sm:$0xf] }
 0x311   :  { %2338 = vmatpush.bf16.msrb.mxu2 %v3218_v4  ;;  %v1566_v45 = vrot.slane %v1564_v61, 2  ;;  %v3386_v4 = vor.u32 %v3719_v10, %v3385_v37  ;;  %v3742_v61 = vld [vmem:[%s5571_s7 + $0x38] sm:$0xff]  ;;  %v1702_v10 = vperm.slane %v1698_v52, 2 }
 0x313   :  { %2327 = vmatpush.bf16.msrb.mxu0 %v3098_v39  ;;  %2349 = vmatpush.bf16.msra.mxu1 %v3338_v11  ;;  %v1567_v62 = vsel %vm618_vm11, %v1566_v45, %v1565_v43  ;;  %v3713_v39 = vld [vmem:[%s5569_s5 + $0x250] sm:$0xf0] }
 0x314   :  { %2291 = vmatmul.bf16.vlgmr.msra.gmra.mxu2 %v5290_v21  ;;  %v5383_v17 = vpack.c.b16 %v1567_v62, %v1567_v62  ;;  %v3362_v11 = vor.u32 %v3713_v39, %v3361_v18  ;;  %v3749_v43 = vld [vmem:[%s5571_s7 + $0x70] sm:$0xff] }
 0x315   :  { %2339 = vmatpush.bf16.msrb.mxu2 %v3206_v55  ;;  %v3737_v55 = vld [vmem:[%s5571_s7 + $0x10] sm:$0xff] }
 0x316   :  { %2265 = vmatmul.bf16.vlgmr.msra.gmra.mxu3 %v5383_v17 }
 0x317   :  { %2328 = vmatpush.bf16.msrb.mxu0 %v3086_v30  ;;  %2350 = vmatpush.bf16.msra.mxu1 %v3326_v7  ;;  %v3746_v30 = vld [vmem:[%s5571_s7 + $0x58] sm:$0xff] }
 0x318   :  { %2361 = vmatpush.bf16.msra.mxu3 %v3446_v51 }
 0x319   :  { %2340 = vmatpush.bf16.msrb.mxu2 %v3194_v3  ;;  %v1700_v3 = vperm.slane %v1698_v52, 0 }
 0x31b   :  { %2329 = vmatpush.bf16.msrb.mxu0 %v3074_v54  ;;  %2351 = vmatpush.bf16.msra.mxu1 %v3314_v22  ;;  %v3753_v54 = vld [vmem:[%s5571_s7 + $0x90] sm:$0xff] }
 0x31c   :  { %2362 = vmatpush.bf16.msra.mxu3 %v3434_v60 }
 0x31d   :  { %2341 = vmatpush.bf16.msrb.mxu2 %v3182_v56 }
 0x31e   :  { %2304 = vmatmul.bf16.vlgmr.msrb.gmra.mxu1 %v5341_v13  ;;  %2330 = vmatmul.bf16.vlgmr.msrb.gmra.mxu0 %v5266_v35  ;;  %v3722_v35 = vld [vmem:[%s5569_s5 + $0x298] sm:$0xf0] }
 0x31f   :  { %2352 = vmatpush.bf16.msra.mxu1 %v3302_v24  ;;  %v3398_v34 = vor.u32 %v3722_v35, %v3397_v32  ;;  %2548 = vmatpush.bf16.msra.mxu0 %v3742_v61 }
 0x320   :  { %2363 = vmatpush.bf16.msra.mxu3 %v3422_v2 }
 0x321   :  { %2342 = vmatpush.bf16.msrb.mxu2 %v3170_v28  ;;  %v1701_v28 = vperm.slane %v1698_v52, 1 }
 0x323   :  { %2353 = vmatpush.bf16.msra.mxu1 %v3290_v31  ;;  %2549 = vmatpush.bf16.msra.mxu0 %v3741_v27 }
 0x324   :  { %2364 = vmatpush.bf16.msra.mxu3 %v3410_v57  ;;  %2343 = vmatmul.bf16.vlgmr.msrb.gmra.mxu2 %v5290_v21  ;;  %v3266_v21 = vor.u32 %v3689_v38, %v3265_v36 }
 0x325   :  { %2561 = vmatpush.bf16.msra.mxu2 %v3750_v8 }
 0x326   :  { %2317 = vmatmul.bf16.vlgmr.msrb.gmra.mxu3 %v5383_v17 }
 0x327   :  { %2354 = vmatpush.bf16.msra.mxu1 %v3278_v33  ;;  %2550 = vmatpush.bf16.msra.mxu0 %v3740_v41  ;;  %v2595_v41 = vld [vmem:[%s5573_s9 + $0x18] sm:$0x1] }
 0x328   :  { %2365 = vmatpush.bf16.msra.mxu3 %v3398_v34 }
 0x329   :  { %2562 = vmatpush.bf16.msra.mxu2 %v3749_v43 }
 0x32b   :  { %2355 = vmatpush.bf16.msra.mxu1 %v3266_v21 }
 0x32c   :  { %2366 = vmatpush.bf16.msra.mxu3 %v3386_v4 }
 0x32d   :  { %2563 = vmatpush.bf16.msra.mxu2 %v3748_v40 }
 0x32e   :  { %2356 = vmatmul.bf16.vlgmr.msra.gmra.mxu1 %v5341_v13  ;;  %v3739_v13 = vld [vmem:[%s5571_s7 + $0x20] sm:$0xff] }
 0x32f   :  { %2551 = vmatpush.bf16.msra.mxu0 %v3739_v13  ;;  %2578 = vmatpush.bf16.msrb.mxu1 %v3754_v63  ;;  %v2613_v13 = vunpack.c.l.b16 %v2595_v41 }
 0x330   :  { %2367 = vmatpush.bf16.msra.mxu3 %v3374_v58 }
 0x331   :  { %2564 = vmatpush.bf16.msra.mxu2 %v3747_v23  ;;  %v3763_v23 = vld [vmem:[%s5572_s8] ss:$0 sm:$0xff]  ;;  %s2650_s8 = sshll.u32 %s5575_s11, 4  ;;  %s2651_s8 = int_to_ptr.hbm [resolvable:$true] %s2650_s8 }
 0x333   :  { %2552 = vmatpush.bf16.msra.mxu0 %v3738_v42  ;;  %2579 = vmatpush.bf16.msrb.mxu1 %v3753_v54  ;;  %v2617_v42 = vpack.c.b16 %v2613_v13, %v2613_v13 }
 0x334   :  { %2368 = vmatpush.bf16.msra.mxu3 %v3362_v11 }
 0x335   :  { %2565 = vmatpush.bf16.msra.mxu2 %v3746_v30  ;;  %v2626_v8 = vsel %vm614_vm10, %v2617_v42, 0 }
 0x337   :  { %2369 = vmatmul.bf16.vlgmr.msra.gmra.mxu3 %v5383_v17  ;;  %2553 = vmatpush.bf16.msra.mxu0 %v3737_v55  ;;  %v3757_v55 = vld [vmem:[%s5573_s9 + $0x10] sm:$0xff] }
 0x338   :  { %2580 = vmatpush.bf16.msrb.mxu1 %v3752_v50  ;;  %2632 = vmatpush.bf16.msrb.mxu3 %v2626_v8 }
 0x339   :  { %2566 = vmatpush.bf16.msra.mxu2 %v3745_v49 }
 0x33b   :  { %2554 = vmatpush.bf16.msra.mxu0 %v3736_v46  ;;  %v3755_v46 = vld [vmem:[%s5573_s9] sm:$0xff] }
 0x33c   :  { %2581 = vmatpush.bf16.msrb.mxu1 %v3751_v9  ;;  %2633 = vmatpush.bf16.msrb.mxu3 %v3757_v55 }
 0x33d   :  { %2567 = vmatpush.bf16.msra.mxu2 %v3744_v19 }
 0x33f   :  { %2555 = vmatpush.bf16.msra.mxu0 %v3735_v47 }
 0x341   :  { %2568 = vmatpush.bf16.msra.mxu2 %v3743_v0 }
 0x37b   :  { %v2227_v45 = vpop.f32.mrf.mxu0 }
 0x37c   :  { %v2228_v22 = vadd.f32 %v2227_v45, %v1700_v3  ;;  %v3756_v45 = vld [vmem:[%s5573_s9 + $0x8] sm:$0xff]  ;;  %s3795_s9 = smov [#allocation2]  }
 0x37d   :  { %2634 = vmatpush.bf16.msrb.mxu3 %v3756_v45  ;;  %s2648_s26 = sshll.u32 %s3795_s9, 4  ;;  %s2649_s26 = int_to_ptr.vmem [resolvable:$true] %s2648_s26 }
 0x381   :  { %2635 = vmatpush.bf16.msrb.mxu3 %v3755_v46 }
 0x383   :  { %v2229_v62 = vpop.f32.mrf.mxu0 }
 0x387   :  { %v2240_v7 = vpop.f32.mrf.mxu2 }
 0x388   :  { %v2241_v60 = vadd.f32 %v2240_v7, %v2228_v22 }
 0x38b   :  { %v2253_v17 = vpop.f32.mrf.mxu1  ;;  %v2279_v51 = vpop.f32.mrf.mxu0 }
 0x38c   :  { %v2254_v56 = vadd.f32 %v2253_v17, %v2241_v60  ;;  %v2280_v57 = vadd.f32 %v2279_v51, %v1701_v28 }
 0x38f   :  { %v2242_v53 = vpop.f32.mrf.mxu2 }
 0x390   :  { %v3764_v53 = vld [vmem:[%s5574_s10] ss:$0 sm:$0xff] }
 0x393   :  { %v2255_v26 = vpop.f32.mrf.mxu1  ;;  %v2281_v15 = vpop.f32.mrf.mxu0 }
 0x397   :  { %v2292_v48 = vpop.f32.mrf.mxu2 }
 0x398   :  { %v2293_v44 = vadd.f32 %v2292_v48, %v2280_v57 }
 0x399   :  { %v2266_v59 = vpop.f32.mrf.mxu3 }
 0x39a   :  { %v2267_v16 = vadd.f32 %v2266_v59, %v2254_v56 }
 0x39b   :  { %v2305_v6 = vpop.f32.mrf.mxu1  ;;  %v2331_v25 = vpop.f32.mrf.mxu0 }
 0x39c   :  { %v2374_v24 = vmax.f32 %v2267_v16, 0.0  ;;  %v2306_v32 = vadd.f32 %v2305_v6, %v2293_v44  ;;  %v2332_v12 = vadd.f32 %v2331_v25, %v1702_v10 }
 0x39e   :  { %v2377_v2 = vpack.c.bf16 %v2374_v24, %v2374_v24 }
 0x39f   :  { %v2294_v29 = vpop.f32.mrf.mxu2 }
 0x3a0   :  { %2556 = vmatmul.bf16.vlgmr.msra.gmra.mxu0 %v2377_v2 }
 0x3a1   :  { %v2268_v1 = vpop.f32.mrf.mxu3 }
 0x3a3   :  { %v2307_v20 = vpop.f32.mrf.mxu1  ;;  %v2333_v31 = vpop.f32.mrf.mxu0 }
 0x3a7   :  { %v2344_v14 = vpop.f32.mrf.mxu2 }
 0x3a8   :  { %v2345_v5 = vadd.f32 %v2344_v14, %v2332_v12 }
 0x3a9   :  { %v2318_v35 = vpop.f32.mrf.mxu3 }
 0x3aa   :  { %v2319_v33 = vadd.f32 %v2318_v35, %v2306_v32 }
 0x3ab   :  { %v2357_v34 = vpop.f32.mrf.mxu1 }
 0x3ac   :  { %v2375_v36 = vmax.f32 %v2319_v33, 0.0  ;;  %v2358_v58 = vadd.f32 %v2357_v34, %v2345_v5 }
 0x3ae   :  { %v2378_v38 = vpack.c.bf16 %v2375_v36, %v2375_v36 }
 0x3af   :  { %v2346_v37 = vpop.f32.mrf.mxu2 }
 0x3b0   :  { %2569 = vmatmul.bf16.vlgmr.msra.gmra.mxu2 %v2378_v38 }
 0x3b1   :  { %v2320_v21 = vpop.f32.mrf.mxu3 }
 0x3b3   :  { %v2359_v4 = vpop.f32.mrf.mxu1 }
 0x3ba   :  { %v2370_v18 = vpop.f32.mrf.mxu3 }
 0x3bb   :  { %v2371_v39 = vadd.f32 %v2370_v18, %v2358_v58 }
 0x3bd   :  { %v2376_v11 = vmax.f32 %v2371_v39, 0.0 }
 0x3bf   :  { %v2379_v61 = vpack.c.bf16 %v2376_v11, %v2376_v11 }
 0x3c1   :  { %3527 = vmatmul.msk.bf16.vlgmr.msrb.gmra.mxu1 %vm2544_vm14, %v2379_v61 }
 0x3c2   :  { %v2372_v27 = vpop.f32.mrf.mxu3 }
 0x41d   :  { %v2557_v43 = vpop.f32.mrf.mxu0 }
 0x41e   :  { %v2558_v62 = vadd.f32 %v3763_v23, %v2557_v43 }
 0x425   :  { %v2559_v40 = vpop.f32.mrf.mxu0 }
 0x433   :  { %v2570_v47 = vpop.f32.mrf.mxu2 }
 0x434   :  { %v2571_v7 = vadd.f32 %v2570_v47, %v2558_v62 }
 0x43b   :  { %v2572_v30 = vpop.f32.mrf.mxu2 }
 0x43e   :  { %v2583_v49 = vpop.f32.mrf.mxu1 }
 0x43f   :  { %v2584_v17 = vadd.f32 %v2583_v49, %v2571_v7 }
 0x441   :  { %v2587_v51 = vmax.f32 %v2584_v17, 0.0 }
 0x443   :  { %v2588_v52 = vpack.c.bf16 %v2587_v51, %v2587_v51 }
 0x445   :  { %3540 = vmatmul.msk.bf16.vlgmr.msrb.gmra.mxu3 %vm2621_vm15, %v2588_v52 }
 0x446   :  { %v2585_v19 = vpop.f32.mrf.mxu1 }
 0x4c8   :  { %v2637_v3 = vpop.f32.mrf.mxu3 }
 0x4c9   :  { %v2638_v0 = vadd.f32 %v3764_v53, %v2637_v3 }
 0x4cb   :  { %2642 = vst.msk [vmem:[#allocation2] sm:$0x3] %vm2641_vm0, %v2638_v0 }
 0x4cc   :  { %2653 = dma.vmem_to_hbm [thread:$0]  %s2649_s26, 32, %s2651_s8, [#allocation3]  }
 0x4d0   :  { %v2639_v63 = vpop.f32.mrf.mxu3 }
 0x4d1   :  { %3789 = dma.done.wait [#allocation3], 32  }
 0x4d2   :  { %3790 = vsyncadd [#allocation3], 4294967264 }
 0x4d3   :  { %2658 = vsyncpa [#allocation3], 1 }

</bundles_post_ra>
